<compile_context>
chip_gen: v7x
topology: tpu7x:2x2x1
jax: 0.10.0
libtpu: 0.0.40
codegen_flags: <defaults>
</compile_context>

<pallas_src>
import functools

import jax
import jax.numpy as jnp
from jax import lax
from jax.experimental import pallas as pl
from jax.experimental.pallas import tpu as pltpu

# ---- module hyper-parameters (from the reference) ---------------------------
N_EMBID = 384
N_HEADS = 6
HEAD_SIZE = N_EMBID // N_HEADS  # 64
BLOCK_SIZE = 256                # causal-mask upper bound in the reference


# ---- fused multi-head attention kernel (one batch block per grid step) ------
def _mha_fused_kernel(x_ref, wqkv_ref, wproj_ref, bproj_ref, bias_ref,
                      o_ref, cat_ref, *, n_heads, head_size):
    # x_ref   : (Bblk, T, C)   f32
    # wqkv_ref: (C, 3C)        bf16 (scale already folded into Q columns)
    # wproj_ref:(C, C)         bf16
    # bproj_ref:(1, C)         f32
    # bias_ref: (T, T)         f32 additive causal bias (0 / -1e30)
    # o_ref   : (Bblk, T, C)
    # cat_ref : (Bblk, T, C)   f32 VMEM scratch (lane-dense head-concat slab)
    Bblk, T, C = x_ref.shape
    H = head_size
    mxu_dtype = wqkv_ref.dtype          # bf16 by default, f32 if requested

    # Fused Q/K/V projection for all heads and all Bblk batch rows at once:
    # one (Bblk*T, C) @ (C, 3C) matmul -> full MXU fill on the N dimension.
    x2d = x_ref[...].reshape(Bblk * T, C).astype(mxu_dtype)
    qkv = jnp.dot(x2d, wqkv_ref[...],
                  preferred_element_type=jnp.float32)        # (Bblk*T, 3C) f32
    qkv = qkv.reshape(Bblk, T, 3 * C)

    bias = bias_ref[...]                                      # (T, T) f32

    # Static unroll over the 6 heads; softmax math stays f32 (v5e has no bf16
    # VPU/EUP).  Attention dropout omitted (nn.Dropout is identity in eval).
    for h in range(n_heads):
        q = qkv[:, :, h * H:(h + 1) * H].astype(mxu_dtype)            # (Bblk,T,H)
        k = qkv[:, :, C + h * H:C + (h + 1) * H].astype(mxu_dtype)    # (Bblk,T,H)
        v = qkv[:, :, 2 * C + h * H:2 * C + (h + 1) * H].astype(mxu_dtype)

        # QK^T without materializing a K transpose: contract the head dim.
        s = lax.dot_general(q, k, (((2,), (2,)), ((0,), (0,))),
                            preferred_element_type=jnp.float32)       # (Bblk,T,T)
        s = s + bias                                     # additive causal mask

        m = jnp.max(s, axis=-1, keepdims=True)
        p = jnp.exp(s - m)                               # unnormalized, in [0,1]
        l = jnp.sum(p, axis=-1, keepdims=True)           # (Bblk, T, 1)

        pv = lax.dot_general(p.astype(mxu_dtype), v,
                             (((2,), (1,)), ((0,), (0,))),
                             preferred_element_type=jnp.float32)      # (Bblk,T,H)

        # Deferred normalization: scale the (T, H) output, not the (T, T) probs.
        cat_ref[:, :, h * H:(h + 1) * H] = pv * pl.reciprocal(l, approx=True)

    # Fused output projection epilogue: Linear(n_embid, n_embid) with bias.
    cat2d = cat_ref[...].reshape(Bblk * T, C).astype(mxu_dtype)
    proj = jnp.dot(cat2d, wproj_ref[...],
                   preferred_element_type=jnp.float32) + bproj_ref[...]
    # TODO(synk): final (residual) dropout omitted — identity in eval mode.
    # TODO(synk): for T >> 1K (esp. v7x, 64 MiB VMEM) add a flash-style KV-block
    # grid axis with online softmax; for B == 1 on v7x add a second "parallel"
    # grid axis over query tiles so both TensorCores get work.

    o_ref[...] = proj.reshape(Bblk, T, C).astype(o_ref.dtype)


# ---- batch-block heuristic ---------------------------------------------------
def _pick_bblk(B, T, C):
    """Largest divisor of B whose per-step VMEM footprint fits, preferring
    >= 2 grid steps so the 'parallel' batch axis feeds both v7x TensorCores."""
    def fits(bb):
        per = bb * T * (4 * C * 2        # x block (double-buffered, f32)
                        + 4 * C * 2      # output block (double-buffered, f32)
                        + 4 * C          # concat scratch
                        + 4 * 3 * C      # qkv intermediate
                        + 4 * 3 * T)     # live (T, T) score tiles
        return per + (4 << 20) <= (24 << 20)   # weights + headroom
    divs = [d for d in range(1, B + 1) if B % d == 0 and fits(d)]
    if not divs:
        return 1
    multi = [d for d in divs if B // d >= 2]
    return max(multi) if multi else max(divs)


# ---- one-time weight preprocessing (outside the jitted call) -----------------
def pack_params(wq, wk, wv, w_proj_t, b_proj, mxu_dtype=jnp.bfloat16):
    """Pack per-head weights into (C, 3C), fold the softmax scale into the Q
    columns, and cast MXU operands (bf16 by default, f32 accumulation kept)."""
    nh, C, H = wq.shape
    # NOTE: the reference scales scores by C ** -0.5 (embedding dim, 384),
    # not head_size ** -0.5 — kept intentionally to match the PyTorch module.
    scale = jnp.float32(C) ** -0.5

    def _cat(w):  # (nh, C, H) -> (C, nh*H)
        return jnp.transpose(w, (1, 0, 2)).reshape(C, nh * H)

    wqkv = jnp.concatenate(
        [_cat(wq) * scale, _cat(wk), _cat(wv)], axis=-1)     # (C, 3C) f32
    return (wqkv.astype(mxu_dtype),
            w_proj_t.astype(mxu_dtype),
            b_proj.astype(jnp.float32))


# ---- wrapper ------------------------------------------------------------------
@jax.jit
def multi_head_attention(x, wqkv, wproj, bproj):
    """x: [B,T,C].  wqkv: [C,3C] (packed, scale-folded).  wproj: [C,C].  bproj: [1,C]."""
    B, T, C = x.shape
    bblk = _pick_bblk(B, T, C)

    # Additive causal bias (finite sentinel, NaN-safe under full masking).
    tril = jnp.tril(jnp.ones((T, T), dtype=bool))
    mask_bias = jnp.where(tril, 0.0, -1e30).astype(jnp.float32)

    kernel = functools.partial(
        _mha_fused_kernel, n_heads=N_HEADS, head_size=HEAD_SIZE)

    return pl.pallas_call(
        kernel,
        out_shape=jax.ShapeDtypeStruct((B, T, C), x.dtype),
        grid_spec=pltpu.PrefetchScalarGridSpec(
            num_scalar_prefetch=0,
            grid=(B // bblk,),
            in_specs=[
                pl.BlockSpec((bblk, T, C), lambda b: (b, 0, 0)),
                # Weights / mask use constant index maps -> stay VMEM-resident
                # across the batch grid (no re-DMA of unchanged blocks).
                pl.BlockSpec((C, 3 * C), lambda b: (0, 0)),
                pl.BlockSpec((C, C), lambda b: (0, 0)),
                pl.BlockSpec((1, C), lambda b: (0, 0)),
                pl.BlockSpec((T, T), lambda b: (0, 0)),
            ],
            out_specs=pl.BlockSpec((bblk, T, C), lambda b: (b, 0, 0)),
            scratch_shapes=[pltpu.VMEM((bblk, T, C), jnp.float32)],
        ),
        compiler_params=pltpu.CompilerParams(
            dimension_semantics=("parallel",),
            vmem_limit_bytes=32 * 1024 * 1024,
        ),
    )(x, wqkv, wproj, bproj, mask_bias)


# ---- pure-JAX reference (mirrors the PyTorch module, eval mode) ---------------
def _reference(x, wq, wk, wv, w_proj_t, b_proj):
    B, T, C = x.shape
    outs = []
    for h in range(wq.shape[0]):
        q = x @ wq[h]
        k = x @ wk[h]
        v = x @ wv[h]
        wei = (q @ jnp.swapaxes(k, -2, -1)) * (C ** -0.5)
        mask = jnp.tril(jnp.ones((T, T), bool))
        wei = jnp.where(mask, wei, -jnp.inf)
        wei = jax.nn.softmax(wei, axis=-1)
        outs.append(wei @ v)
    cat = jnp.concatenate(outs, axis=-1)
    return cat @ w_proj_t + b_proj


# ---- deterministic parameter construction --------------------------------------
def make_params(key):
    kq, kk, kv, kp, kb = jax.random.split(key, 5)
    scale_in = 1.0 / jnp.sqrt(jnp.float32(N_EMBID))
    # nn.Linear(n_embid, head_size, bias=False) weight is [H, C]; we store W.T
    # stacked over heads as [n_heads, C, H].
    wq = jax.random.uniform(kq, (N_HEADS, N_EMBID, HEAD_SIZE), jnp.float32,
                            -scale_in, scale_in)
    wk = jax.random.uniform(kk, (N_HEADS, N_EMBID, HEAD_SIZE), jnp.float32,
                            -scale_in, scale_in)
    wv = jax.random.uniform(kv, (N_HEADS, N_EMBID, HEAD_SIZE), jnp.float32,
                            -scale_in, scale_in)
    # nn.Linear(n_embid, n_embid) weight is [C, C]; we store its transpose.
    w_proj_t = jax.random.uniform(kp, (N_EMBID, N_EMBID), jnp.float32,
                                  -scale_in, scale_in)
    b_proj = jax.random.uniform(kb, (1, N_EMBID), jnp.float32,
                                -scale_in, scale_in)
    return wq, wk, wv, w_proj_t, b_proj


if __name__ == "__main__":
    key = jax.random.PRNGKey(0)
    k_x, k_p = jax.random.split(key)

    B, T = 2, 8                      # small seq; T <= block_size (256)
    x = jax.random.normal(k_x, (B, T, N_EMBID), jnp.float32)
    wq, wk, wv, w_proj_t, b_proj = make_params(k_p)

    ref = _reference(x, wq, wk, wv, w_proj_t, b_proj)

    # Fast path: bf16 MXU operands (default), f32 accumulation.
    wqkv, wproj, bproj = pack_params(wq, wk, wv, w_proj_t, b_proj)
    out = jax.block_until_ready(multi_head_attention(x, wqkv, wproj, bproj))
    assert out.shape == (B, T, N_EMBID), out.shape
    assert jnp.all(jnp.isfinite(out)), "non-finite output"
    max_err_bf16 = float(jnp.max(jnp.abs(out - ref)))
    assert max_err_bf16 < 5e-2, f"bf16 path deviates: max_err={max_err_bf16}"

    # Reference-precision path: f32 MXU operands (same kernel, tighter check).
    wqkv32, wproj32, bproj32 = pack_params(wq, wk, wv, w_proj_t, b_proj,
                                           mxu_dtype=jnp.float32)
    out32 = jax.block_until_ready(multi_head_attention(x, wqkv32, wproj32, bproj32))
    max_err_f32 = float(jnp.max(jnp.abs(out32 - ref)))
    assert max_err_f32 < 1e-2, f"f32 path deviates: max_err={max_err_f32}"

    print("KERNEL_OK")
</pallas_src>

<mosaic_0001>
module attributes {stable_mosaic.version = 11 : i64} {
  func.func @_mha_fused_kernel(%arg0: i32, %arg1: memref<1x8x384xf32, #tpu.memory_space<vmem>>, %arg2: memref<384x1152xbf16, #tpu.memory_space<vmem>>, %arg3: memref<384x384xbf16, #tpu.memory_space<vmem>>, %arg4: memref<1x384xf32, #tpu.memory_space<vmem>>, %arg5: memref<8x8xf32, #tpu.memory_space<vmem>>, %arg6: memref<1x8x384xf32, #tpu.memory_space<vmem>>, %arg7: memref<1x8x384xf32, #tpu.memory_space<vmem>>) attributes {dimension_semantics = [#tpu.dimension_semantics<parallel>], iteration_bounds = array<i64: 2>, scalar_prefetch = 0 : i64, scratch_operands = 1 : i64, tpu.core_type = #tpu.core_type<tc>, window_params = [{transform_indices = @transform_0, window_bounds = array<i64: 1, 8, 384>}, {pipeline_mode = #tpu.pipeline_mode<synchronous>, transform_indices = @transform_1, window_bounds = array<i64: 384, 1152>}, {pipeline_mode = #tpu.pipeline_mode<synchronous>, transform_indices = @transform_2, window_bounds = array<i64: 384, 384>}, {pipeline_mode = #tpu.pipeline_mode<synchronous>, transform_indices = @transform_3, window_bounds = array<i64: 1, 384>}, {pipeline_mode = #tpu.pipeline_mode<synchronous>, transform_indices = @transform_4, window_bounds = array<i64: 8, 8>}, {transform_indices = @transform_5, window_bounds = array<i64: 1, 8, 384>}]} {
    %c0 = arith.constant 0 : index
    %c0_0 = arith.constant 0 : index
    %c0_1 = arith.constant 0 : index
    %0 = vector.load %arg1[%c0, %c0_0, %c0_1] : memref<1x8x384xf32, #tpu.memory_space<vmem>>, vector<1x8x384xf32>
    %1 = vector.shape_cast %0 : vector<1x8x384xf32> to vector<8x384xf32>
    %2 = arith.truncf %1 : vector<8x384xf32> to vector<8x384xbf16>
    %c0_2 = arith.constant 0 : index
    %c0_3 = arith.constant 0 : index
    %3 = vector.load %arg2[%c0_2, %c0_3] : memref<384x1152xbf16, #tpu.memory_space<vmem>>, vector<384x1152xbf16>
    %cst = arith.constant dense<0.000000e+00> : vector<8x1152xf32>
    %4 = tpu.matmul %2, %3, %cst {dimension_numbers = #tpu.dot_dimension_numbers<[1], [0], [0], [1], [0, 0, 1, 1], [], []>} : vector<8x384xbf16>, vector<384x1152xbf16>, vector<8x1152xf32> -> vector<8x1152xf32>
    %5 = vector.shape_cast %4 : vector<8x1152xf32> to vector<1x8x1152xf32>
    %c0_4 = arith.constant 0 : index
    %c0_5 = arith.constant 0 : index
    %6 = vector.load %arg5[%c0_4, %c0_5] : memref<8x8xf32, #tpu.memory_space<vmem>>, vector<8x8xf32>
    %7 = vector.extract_strided_slice %5 {offsets = [0, 0, 0], sizes = [1, 8, 64], strides = [1, 1, 1]} : vector<1x8x1152xf32> to vector<1x8x64xf32>
    %8 = arith.truncf %7 : vector<1x8x64xf32> to vector<1x8x64xbf16>
    %9 = vector.extract_strided_slice %5 {offsets = [0, 0, 384], sizes = [1, 8, 64], strides = [1, 1, 1]} : vector<1x8x1152xf32> to vector<1x8x64xf32>
    %10 = arith.truncf %9 : vector<1x8x64xf32> to vector<1x8x64xbf16>
    %11 = vector.extract_strided_slice %5 {offsets = [0, 0, 768], sizes = [1, 8, 64], strides = [1, 1, 1]} : vector<1x8x1152xf32> to vector<1x8x64xf32>
    %12 = arith.truncf %11 : vector<1x8x64xf32> to vector<1x8x64xbf16>
    %cst_6 = arith.constant dense<0.000000e+00> : vector<1x8x8xf32>
    %13 = tpu.matmul %8, %10, %cst_6 {dimension_numbers = #tpu.dot_dimension_numbers<[2], [2], [1], [1], [0, 0, 0, 1, 1, 1], [0], [0]>} : vector<1x8x64xbf16>, vector<1x8x64xbf16>, vector<1x8x8xf32> -> vector<1x8x8xf32>
    %14 = vector.shape_cast %6 : vector<8x8xf32> to vector<1x8x8xf32>
    %15 = arith.addf %13, %14 : vector<1x8x8xf32>
    %cst_7 = arith.constant dense<0xFF800000> : vector<1x8xf32>
    %16 = vector.multi_reduction <maximumf>, %15, %cst_7 [2] : vector<1x8x8xf32> to vector<1x8xf32>
    %17 = vector.shape_cast %16 : vector<1x8xf32> to vector<1x8x1xf32>
    %18 = vector.broadcast %17 : vector<1x8x1xf32> to vector<1x8x8xf32>
    %19 = arith.subf %15, %18 : vector<1x8x8xf32>
    %20 = math.exp %19 : vector<1x8x8xf32>
    %cst_8 = arith.constant dense<0.000000e+00> : vector<1x8xf32>
    %21 = vector.multi_reduction <add>, %20, %cst_8 [2] : vector<1x8x8xf32> to vector<1x8xf32>
    %22 = vector.shape_cast %21 : vector<1x8xf32> to vector<1x8x1xf32>
    %23 = arith.truncf %20 : vector<1x8x8xf32> to vector<1x8x8xbf16>
    %cst_9 = arith.constant dense<0.000000e+00> : vector<1x8x64xf32>
    %24 = tpu.matmul %23, %12, %cst_9 {dimension_numbers = #tpu.dot_dimension_numbers<[2], [1], [1], [2], [0, 0, 0, 1, 1, 2], [0], [0]>} : vector<1x8x8xbf16>, vector<1x8x64xbf16>, vector<1x8x64xf32> -> vector<1x8x64xf32>
    %25 = tpu.reciprocal %22 {approx = true} : vector<1x8x1xf32> -> vector<1x8x1xf32>
    %26 = vector.broadcast %25 : vector<1x8x1xf32> to vector<1x8x64xf32>
    %27 = arith.mulf %24, %26 : vector<1x8x64xf32>
    %c0_10 = arith.constant 0 : index
    %c0_11 = arith.constant 0 : index
    %c0_12 = arith.constant 0 : index
    %28 = vector.load %arg7[%c0_10, %c0_11, %c0_12] : memref<1x8x384xf32, #tpu.memory_space<vmem>>, vector<1x8x64xf32>
    tpu.vector_store %arg7[%c0_10, %c0_11, %c0_12], %27 {strides = array<i32>} : memref<1x8x384xf32, #tpu.memory_space<vmem>>, vector<1x8x64xf32>,
    %29 = vector.extract_strided_slice %5 {offsets = [0, 0, 64], sizes = [1, 8, 64], strides = [1, 1, 1]} : vector<1x8x1152xf32> to vector<1x8x64xf32>
    %30 = arith.truncf %29 : vector<1x8x64xf32> to vector<1x8x64xbf16>
    %31 = vector.extract_strided_slice %5 {offsets = [0, 0, 448], sizes = [1, 8, 64], strides = [1, 1, 1]} : vector<1x8x1152xf32> to vector<1x8x64xf32>
    %32 = arith.truncf %31 : vector<1x8x64xf32> to vector<1x8x64xbf16>
    %33 = vector.extract_strided_slice %5 {offsets = [0, 0, 832], sizes = [1, 8, 64], strides = [1, 1, 1]} : vector<1x8x1152xf32> to vector<1x8x64xf32>
    %34 = arith.truncf %33 : vector<1x8x64xf32> to vector<1x8x64xbf16>
    %cst_13 = arith.constant dense<0.000000e+00> : vector<1x8x8xf32>
    %35 = tpu.matmul %30, %32, %cst_13 {dimension_numbers = #tpu.dot_dimension_numbers<[2], [2], [1], [1], [0, 0, 0, 1, 1, 1], [0], [0]>} : vector<1x8x64xbf16>, vector<1x8x64xbf16>, vector<1x8x8xf32> -> vector<1x8x8xf32>
    %36 = vector.shape_cast %6 : vector<8x8xf32> to vector<1x8x8xf32>
    %37 = arith.addf %35, %36 : vector<1x8x8xf32>
    %cst_14 = arith.constant dense<0xFF800000> : vector<1x8xf32>
    %38 = vector.multi_reduction <maximumf>, %37, %cst_14 [2] : vector<1x8x8xf32> to vector<1x8xf32>
    %39 = vector.shape_cast %38 : vector<1x8xf32> to vector<1x8x1xf32>
    %40 = vector.broadcast %39 : vector<1x8x1xf32> to vector<1x8x8xf32>
    %41 = arith.subf %37, %40 : vector<1x8x8xf32>
    %42 = math.exp %41 : vector<1x8x8xf32>
    %cst_15 = arith.constant dense<0.000000e+00> : vector<1x8xf32>
    %43 = vector.multi_reduction <add>, %42, %cst_15 [2] : vector<1x8x8xf32> to vector<1x8xf32>
    %44 = vector.shape_cast %43 : vector<1x8xf32> to vector<1x8x1xf32>
    %45 = arith.truncf %42 : vector<1x8x8xf32> to vector<1x8x8xbf16>
    %cst_16 = arith.constant dense<0.000000e+00> : vector<1x8x64xf32>
    %46 = tpu.matmul %45, %34, %cst_16 {dimension_numbers = #tpu.dot_dimension_numbers<[2], [1], [1], [2], [0, 0, 0, 1, 1, 2], [0], [0]>} : vector<1x8x8xbf16>, vector<1x8x64xbf16>, vector<1x8x64xf32> -> vector<1x8x64xf32>
    %47 = tpu.reciprocal %44 {approx = true} : vector<1x8x1xf32> -> vector<1x8x1xf32>
    %48 = vector.broadcast %47 : vector<1x8x1xf32> to vector<1x8x64xf32>
    %49 = arith.mulf %46, %48 : vector<1x8x64xf32>
    %c0_17 = arith.constant 0 : index
    %c0_18 = arith.constant 0 : index
    %c64 = arith.constant 64 : index
    %50 = vector.load %arg7[%c0_17, %c0_18, %c64] : memref<1x8x384xf32, #tpu.memory_space<vmem>>, vector<1x8x64xf32>
    tpu.vector_store %arg7[%c0_17, %c0_18, %c64], %49 {strides = array<i32>} : memref<1x8x384xf32, #tpu.memory_space<vmem>>, vector<1x8x64xf32>,
    %51 = vector.extract_strided_slice %5 {offsets = [0, 0, 128], sizes = [1, 8, 64], strides = [1, 1, 1]} : vector<1x8x1152xf32> to vector<1x8x64xf32>
    %52 = arith.truncf %51 : vector<1x8x64xf32> to vector<1x8x64xbf16>
    %53 = vector.extract_strided_slice %5 {offsets = [0, 0, 512], sizes = [1, 8, 64], strides = [1, 1, 1]} : vector<1x8x1152xf32> to vector<1x8x64xf32>
    %54 = arith.truncf %53 : vector<1x8x64xf32> to vector<1x8x64xbf16>
    %55 = vector.extract_strided_slice %5 {offsets = [0, 0, 896], sizes = [1, 8, 64], strides = [1, 1, 1]} : vector<1x8x1152xf32> to vector<1x8x64xf32>
    %56 = arith.truncf %55 : vector<1x8x64xf32> to vector<1x8x64xbf16>
    %cst_19 = arith.constant dense<0.000000e+00> : vector<1x8x8xf32>
    %57 = tpu.matmul %52, %54, %cst_19 {dimension_numbers = #tpu.dot_dimension_numbers<[2], [2], [1], [1], [0, 0, 0, 1, 1, 1], [0], [0]>} : vector<1x8x64xbf16>, vector<1x8x64xbf16>, vector<1x8x8xf32> -> vector<1x8x8xf32>
    %58 = vector.shape_cast %6 : vector<8x8xf32> to vector<1x8x8xf32>
    %59 = arith.addf %57, %58 : vector<1x8x8xf32>
    %cst_20 = arith.constant dense<0xFF800000> : vector<1x8xf32>
    %60 = vector.multi_reduction <maximumf>, %59, %cst_20 [2] : vector<1x8x8xf32> to vector<1x8xf32>
    %61 = vector.shape_cast %60 : vector<1x8xf32> to vector<1x8x1xf32>
    %62 = vector.broadcast %61 : vector<1x8x1xf32> to vector<1x8x8xf32>
    %63 = arith.subf %59, %62 : vector<1x8x8xf32>
    %64 = math.exp %63 : vector<1x8x8xf32>
    %cst_21 = arith.constant dense<0.000000e+00> : vector<1x8xf32>
    %65 = vector.multi_reduction <add>, %64, %cst_21 [2] : vector<1x8x8xf32> to vector<1x8xf32>
    %66 = vector.shape_cast %65 : vector<1x8xf32> to vector<1x8x1xf32>
    %67 = arith.truncf %64 : vector<1x8x8xf32> to vector<1x8x8xbf16>
    %cst_22 = arith.constant dense<0.000000e+00> : vector<1x8x64xf32>
    %68 = tpu.matmul %67, %56, %cst_22 {dimension_numbers = #tpu.dot_dimension_numbers<[2], [1], [1], [2], [0, 0, 0, 1, 1, 2], [0], [0]>} : vector<1x8x8xbf16>, vector<1x8x64xbf16>, vector<1x8x64xf32> -> vector<1x8x64xf32>
    %69 = tpu.reciprocal %66 {approx = true} : vector<1x8x1xf32> -> vector<1x8x1xf32>
    %70 = vector.broadcast %69 : vector<1x8x1xf32> to vector<1x8x64xf32>
    %71 = arith.mulf %68, %70 : vector<1x8x64xf32>
    %c0_23 = arith.constant 0 : index
    %c0_24 = arith.constant 0 : index
    %c128 = arith.constant 128 : index
    %72 = vector.load %arg7[%c0_23, %c0_24, %c128] : memref<1x8x384xf32, #tpu.memory_space<vmem>>, vector<1x8x64xf32>
    tpu.vector_store %arg7[%c0_23, %c0_24, %c128], %71 {strides = array<i32>} : memref<1x8x384xf32, #tpu.memory_space<vmem>>, vector<1x8x64xf32>,
    %73 = vector.extract_strided_slice %5 {offsets = [0, 0, 192], sizes = [1, 8, 64], strides = [1, 1, 1]} : vector<1x8x1152xf32> to vector<1x8x64xf32>
    %74 = arith.truncf %73 : vector<1x8x64xf32> to vector<1x8x64xbf16>
    %75 = vector.extract_strided_slice %5 {offsets = [0, 0, 576], sizes = [1, 8, 64], strides = [1, 1, 1]} : vector<1x8x1152xf32> to vector<1x8x64xf32>
    %76 = arith.truncf %75 : vector<1x8x64xf32> to vector<1x8x64xbf16>
    %77 = vector.extract_strided_slice %5 {offsets = [0, 0, 960], sizes = [1, 8, 64], strides = [1, 1, 1]} : vector<1x8x1152xf32> to vector<1x8x64xf32>
    %78 = arith.truncf %77 : vector<1x8x64xf32> to vector<1x8x64xbf16>
    %cst_25 = arith.constant dense<0.000000e+00> : vector<1x8x8xf32>
    %79 = tpu.matmul %74, %76, %cst_25 {dimension_numbers = #tpu.dot_dimension_numbers<[2], [2], [1], [1], [0, 0, 0, 1, 1, 1], [0], [0]>} : vector<1x8x64xbf16>, vector<1x8x64xbf16>, vector<1x8x8xf32> -> vector<1x8x8xf32>
    %80 = vector.shape_cast %6 : vector<8x8xf32> to vector<1x8x8xf32>
    %81 = arith.addf %79, %80 : vector<1x8x8xf32>
    %cst_26 = arith.constant dense<0xFF800000> : vector<1x8xf32>
    %82 = vector.multi_reduction <maximumf>, %81, %cst_26 [2] : vector<1x8x8xf32> to vector<1x8xf32>
    %83 = vector.shape_cast %82 : vector<1x8xf32> to vector<1x8x1xf32>
    %84 = vector.broadcast %83 : vector<1x8x1xf32> to vector<1x8x8xf32>
    %85 = arith.subf %81, %84 : vector<1x8x8xf32>
    %86 = math.exp %85 : vector<1x8x8xf32>
    %cst_27 = arith.constant dense<0.000000e+00> : vector<1x8xf32>
    %87 = vector.multi_reduction <add>, %86, %cst_27 [2] : vector<1x8x8xf32> to vector<1x8xf32>
    %88 = vector.shape_cast %87 : vector<1x8xf32> to vector<1x8x1xf32>
    %89 = arith.truncf %86 : vector<1x8x8xf32> to vector<1x8x8xbf16>
    %cst_28 = arith.constant dense<0.000000e+00> : vector<1x8x64xf32>
    %90 = tpu.matmul %89, %78, %cst_28 {dimension_numbers = #tpu.dot_dimension_numbers<[2], [1], [1], [2], [0, 0, 0, 1, 1, 2], [0], [0]>} : vector<1x8x8xbf16>, vector<1x8x64xbf16>, vector<1x8x64xf32> -> vector<1x8x64xf32>
    %91 = tpu.reciprocal %88 {approx = true} : vector<1x8x1xf32> -> vector<1x8x1xf32>
    %92 = vector.broadcast %91 : vector<1x8x1xf32> to vector<1x8x64xf32>
    %93 = arith.mulf %90, %92 : vector<1x8x64xf32>
    %c0_29 = arith.constant 0 : index
    %c0_30 = arith.constant 0 : index
    %c192 = arith.constant 192 : index
    %94 = vector.load %arg7[%c0_29, %c0_30, %c192] : memref<1x8x384xf32, #tpu.memory_space<vmem>>, vector<1x8x64xf32>
    tpu.vector_store %arg7[%c0_29, %c0_30, %c192], %93 {strides = array<i32>} : memref<1x8x384xf32, #tpu.memory_space<vmem>>, vector<1x8x64xf32>,
    %95 = vector.extract_strided_slice %5 {offsets = [0, 0, 256], sizes = [1, 8, 64], strides = [1, 1, 1]} : vector<1x8x1152xf32> to vector<1x8x64xf32>
    %96 = arith.truncf %95 : vector<1x8x64xf32> to vector<1x8x64xbf16>
    %97 = vector.extract_strided_slice %5 {offsets = [0, 0, 640], sizes = [1, 8, 64], strides = [1, 1, 1]} : vector<1x8x1152xf32> to vector<1x8x64xf32>
    %98 = arith.truncf %97 : vector<1x8x64xf32> to vector<1x8x64xbf16>
    %99 = vector.extract_strided_slice %5 {offsets = [0, 0, 1024], sizes = [1, 8, 64], strides = [1, 1, 1]} : vector<1x8x1152xf32> to vector<1x8x64xf32>
    %100 = arith.truncf %99 : vector<1x8x64xf32> to vector<1x8x64xbf16>
    %cst_31 = arith.constant dense<0.000000e+00> : vector<1x8x8xf32>
    %101 = tpu.matmul %96, %98, %cst_31 {dimension_numbers = #tpu.dot_dimension_numbers<[2], [2], [1], [1], [0, 0, 0, 1, 1, 1], [0], [0]>} : vector<1x8x64xbf16>, vector<1x8x64xbf16>, vector<1x8x8xf32> -> vector<1x8x8xf32>
    %102 = vector.shape_cast %6 : vector<8x8xf32> to vector<1x8x8xf32>
    %103 = arith.addf %101, %102 : vector<1x8x8xf32>
    %cst_32 = arith.constant dense<0xFF800000> : vector<1x8xf32>
    %104 = vector.multi_reduction <maximumf>, %103, %cst_32 [2] : vector<1x8x8xf32> to vector<1x8xf32>
    %105 = vector.shape_cast %104 : vector<1x8xf32> to vector<1x8x1xf32>
    %106 = vector.broadcast %105 : vector<1x8x1xf32> to vector<1x8x8xf32>
    %107 = arith.subf %103, %106 : vector<1x8x8xf32>
    %108 = math.exp %107 : vector<1x8x8xf32>
    %cst_33 = arith.constant dense<0.000000e+00> : vector<1x8xf32>
    %109 = vector.multi_reduction <add>, %108, %cst_33 [2] : vector<1x8x8xf32> to vector<1x8xf32>
    %110 = vector.shape_cast %109 : vector<1x8xf32> to vector<1x8x1xf32>
    %111 = arith.truncf %108 : vector<1x8x8xf32> to vector<1x8x8xbf16>
    %cst_34 = arith.constant dense<0.000000e+00> : vector<1x8x64xf32>
    %112 = tpu.matmul %111, %100, %cst_34 {dimension_numbers = #tpu.dot_dimension_numbers<[2], [1], [1], [2], [0, 0, 0, 1, 1, 2], [0], [0]>} : vector<1x8x8xbf16>, vector<1x8x64xbf16>, vector<1x8x64xf32> -> vector<1x8x64xf32>
    %113 = tpu.reciprocal %110 {approx = true} : vector<1x8x1xf32> -> vector<1x8x1xf32>
    %114 = vector.broadcast %113 : vector<1x8x1xf32> to vector<1x8x64xf32>
    %115 = arith.mulf %112, %114 : vector<1x8x64xf32>
    %c0_35 = arith.constant 0 : index
    %c0_36 = arith.constant 0 : index
    %c256 = arith.constant 256 : index
    %116 = vector.load %arg7[%c0_35, %c0_36, %c256] : memref<1x8x384xf32, #tpu.memory_space<vmem>>, vector<1x8x64xf32>
    tpu.vector_store %arg7[%c0_35, %c0_36, %c256], %115 {strides = array<i32>} : memref<1x8x384xf32, #tpu.memory_space<vmem>>, vector<1x8x64xf32>,
    %117 = vector.extract_strided_slice %5 {offsets = [0, 0, 320], sizes = [1, 8, 64], strides = [1, 1, 1]} : vector<1x8x1152xf32> to vector<1x8x64xf32>
    %118 = arith.truncf %117 : vector<1x8x64xf32> to vector<1x8x64xbf16>
    %119 = vector.extract_strided_slice %5 {offsets = [0, 0, 704], sizes = [1, 8, 64], strides = [1, 1, 1]} : vector<1x8x1152xf32> to vector<1x8x64xf32>
    %120 = arith.truncf %119 : vector<1x8x64xf32> to vector<1x8x64xbf16>
    %121 = vector.extract_strided_slice %5 {offsets = [0, 0, 1088], sizes = [1, 8, 64], strides = [1, 1, 1]} : vector<1x8x1152xf32> to vector<1x8x64xf32>
    %122 = arith.truncf %121 : vector<1x8x64xf32> to vector<1x8x64xbf16>
    %cst_37 = arith.constant dense<0.000000e+00> : vector<1x8x8xf32>
    %123 = tpu.matmul %118, %120, %cst_37 {dimension_numbers = #tpu.dot_dimension_numbers<[2], [2], [1], [1], [0, 0, 0, 1, 1, 1], [0], [0]>} : vector<1x8x64xbf16>, vector<1x8x64xbf16>, vector<1x8x8xf32> -> vector<1x8x8xf32>
    %124 = vector.shape_cast %6 : vector<8x8xf32> to vector<1x8x8xf32>
    %125 = arith.addf %123, %124 : vector<1x8x8xf32>
    %cst_38 = arith.constant dense<0xFF800000> : vector<1x8xf32>
    %126 = vector.multi_reduction <maximumf>, %125, %cst_38 [2] : vector<1x8x8xf32> to vector<1x8xf32>
    %127 = vector.shape_cast %126 : vector<1x8xf32> to vector<1x8x1xf32>
    %128 = vector.broadcast %127 : vector<1x8x1xf32> to vector<1x8x8xf32>
    %129 = arith.subf %125, %128 : vector<1x8x8xf32>
    %130 = math.exp %129 : vector<1x8x8xf32>
    %cst_39 = arith.constant dense<0.000000e+00> : vector<1x8xf32>
    %131 = vector.multi_reduction <add>, %130, %cst_39 [2] : vector<1x8x8xf32> to vector<1x8xf32>
    %132 = vector.shape_cast %131 : vector<1x8xf32> to vector<1x8x1xf32>
    %133 = arith.truncf %130 : vector<1x8x8xf32> to vector<1x8x8xbf16>
    %cst_40 = arith.constant dense<0.000000e+00> : vector<1x8x64xf32>
    %134 = tpu.matmul %133, %122, %cst_40 {dimension_numbers = #tpu.dot_dimension_numbers<[2], [1], [1], [2], [0, 0, 0, 1, 1, 2], [0], [0]>} : vector<1x8x8xbf16>, vector<1x8x64xbf16>, vector<1x8x64xf32> -> vector<1x8x64xf32>
    %135 = tpu.reciprocal %132 {approx = true} : vector<1x8x1xf32> -> vector<1x8x1xf32>
    %136 = vector.broadcast %135 : vector<1x8x1xf32> to vector<1x8x64xf32>
    %137 = arith.mulf %134, %136 : vector<1x8x64xf32>
    %c0_41 = arith.constant 0 : index
    %c0_42 = arith.constant 0 : index
    %c320 = arith.constant 320 : index
    %138 = vector.load %arg7[%c0_41, %c0_42, %c320] : memref<1x8x384xf32, #tpu.memory_space<vmem>>, vector<1x8x64xf32>
    tpu.vector_store %arg7[%c0_41, %c0_42, %c320], %137 {strides = array<i32>} : memref<1x8x384xf32, #tpu.memory_space<vmem>>, vector<1x8x64xf32>,
    %c0_43 = arith.constant 0 : index
    %c0_44 = arith.constant 0 : index
    %c0_45 = arith.constant 0 : index
    %139 = vector.load %arg7[%c0_43, %c0_44, %c0_45] : memref<1x8x384xf32, #tpu.memory_space<vmem>>, vector<1x8x384xf32>
    %140 = vector.shape_cast %139 : vector<1x8x384xf32> to vector<8x384xf32>
    %141 = arith.truncf %140 : vector<8x384xf32> to vector<8x384xbf16>
    %c0_46 = arith.constant 0 : index
    %c0_47 = arith.constant 0 : index
    %142 = vector.load %arg3[%c0_46, %c0_47] : memref<384x384xbf16, #tpu.memory_space<vmem>>, vector<384x384xbf16>
    %cst_48 = arith.constant dense<0.000000e+00> : vector<8x384xf32>
    %143 = tpu.matmul %141, %142, %cst_48 {dimension_numbers = #tpu.dot_dimension_numbers<[1], [0], [0], [1], [0, 0, 1, 1], [], []>} : vector<8x384xbf16>, vector<384x384xbf16>, vector<8x384xf32> -> vector<8x384xf32>
    %c0_49 = arith.constant 0 : index
    %c0_50 = arith.constant 0 : index
    %144 = vector.load %arg4[%c0_49, %c0_50] : memref<1x384xf32, #tpu.memory_space<vmem>>, vector<1x384xf32>
    %145 = vector.broadcast %144 : vector<1x384xf32> to vector<8x384xf32>
    %146 = arith.addf %143, %145 : vector<8x384xf32>
    %147 = vector.shape_cast %146 : vector<8x384xf32> to vector<1x8x384xf32>
    %c0_51 = arith.constant 0 : index
    %c0_52 = arith.constant 0 : index
    %c0_53 = arith.constant 0 : index
    %148 = vector.load %arg6[%c0_51, %c0_52, %c0_53] : memref<1x8x384xf32, #tpu.memory_space<vmem>>, vector<1x8x384xf32>
    tpu.vector_store %arg6[%c0_51, %c0_52, %c0_53], %147 {strides = array<i32>} : memref<1x8x384xf32, #tpu.memory_space<vmem>>, vector<1x8x384xf32>,
    return
  }
  func.func @transform_0(%arg0: i32) -> (i32, i32, i32) {
    %c0_i32 = arith.constant 0 : i32
    %c0_i32_0 = arith.constant 0 : i32
    %c0_i32_1 = arith.constant 0 : i32
    return %arg0, %c0_i32, %c0_i32_0 : i32, i32, i32
  }
  func.func @transform_1(%arg0: i32) -> (i32, i32) {
    %c0_i32 = arith.constant 0 : i32
    %c0_i32_0 = arith.constant 0 : i32
    %c0_i32_1 = arith.constant 0 : i32
    return %c0_i32, %c0_i32_0 : i32, i32
  }
  func.func @transform_2(%arg0: i32) -> (i32, i32) {
    %c0_i32 = arith.constant 0 : i32
    %c0_i32_0 = arith.constant 0 : i32
    %c0_i32_1 = arith.constant 0 : i32
    return %c0_i32, %c0_i32_0 : i32, i32
  }
  func.func @transform_3(%arg0: i32) -> (i32, i32) {
    %c0_i32 = arith.constant 0 : i32
    %c0_i32_0 = arith.constant 0 : i32
    %c0_i32_1 = arith.constant 0 : i32
    return %c0_i32, %c0_i32_0 : i32, i32
  }
  func.func @transform_4(%arg0: i32) -> (i32, i32) {
    %c0_i32 = arith.constant 0 : i32
    %c0_i32_0 = arith.constant 0 : i32
    %c0_i32_1 = arith.constant 0 : i32
    return %c0_i32, %c0_i32_0 : i32, i32
  }
  func.func @transform_5(%arg0: i32) -> (i32, i32, i32) {
    %c0_i32 = arith.constant 0 : i32
    %c0_i32_0 = arith.constant 0 : i32
    %c0_i32_1 = arith.constant 0 : i32
    return %arg0, %c0_i32, %c0_i32_0 : i32, i32, i32
  }
}

</mosaic_0001>

<bundles_post_ra>
// kernel: multi_head_attention.1
= control target key start
LH: loop header
LB: loop body
LE: loop exit
PB: predicated region body
PF: predicated region fallthrough
CT: control target
= control target key end

     0   :  { %10 = vsyncpa [#allocation4], 0  ;;  %s5157_s0 = inlined_call_operand.hbm [shape: f32[2,8,384], index: 0, kind: input, shape index: {}]   ;;  %s5158_s1 = inlined_call_operand.hbm [shape: bf16[384,1152], index: 1, kind: input, shape index: {}]   ;;  %s5159_s2 = inlined_call_operand.hbm [shape: bf16[384,384], index: 2, kind: input, shape index: {}]   ;;  %s5160_s3 = inlined_call_operand.vmem [shape: f32[1,384], index: 3, kind: input, shape index: {}]   ;;  %s5161_s4 = inlined_call_operand.vmem [shape: f32[8,8], index: 4, kind: input, shape index: {}]   ;;  %s5162_s5 = inlined_call_operand.hbm [shape: f32[2,8,384], index: 5, kind: output, shape index: {}]  }
   0x1   :  { %12 = vsyncpa [#allocation4 + $0x1], 0 }
   0x2   :  { %13 = vsyncpa [#allocation7], 0 }
   0x3   :  { %14 = vsyncpa [#allocation5], 0 }
   0x4   :  { %16 = vsyncpa [#allocation5 + $0x1], 0  ;;  %s4727_s18 = smov 0   ;;  %s4729_s19 = smov 0  }
   0x5   :  { %s4731_s20 = smov 0   ;;  %s4733_s21 = smov 0  }
   0x6 LB: > { %s4748_s22 = sadd.s32 4294967295, %s4683_s21   ;;  %s3484_s23 = sadd.s32 4294967294, %s4683_s21   ;;  %s4683_s21 = sphi %s4733_s21, %s5182_s21   ;;  %s4679_s20 = sphi %s4731_s20, %s5181_s20   ;;  %s4675_s19 = sphi %s4729_s19, %s5180_s19   ;;  %s4671_s18 = sphi %s4727_s18, %s5179_s18  }
   0x7   : > { %p42_p0 = scmp.ne.s32.totalorder %s4675_s19, %s4671_s18  ;;  %p5163_p1 = scmp.eq.s32.totalorder %s4748_s22, 0 }
   0x8   : > { %p156_p3 = scmp.eq.s32.totalorder %s3484_s23, 1  ;;  %p3485_p5 = scmp.ge.s32.totalorder %s4683_s21, 1 }
   0x9   : > { %p4757_p4 = por %p5163_p1, %p42_p0  ;;  %p163_p7 = scmp.lt.s32.totalorder %s4683_s21, 3 }
   0xa   : > { %p4762_p6 = por %p156_p3, %p42_p0  ;;  %s4685_s27 = smov [#allocation6]  }
   0xb   : > { %s5166_s24 = scalar_select %p4757_p4, 1, 0 }
   0xc   : > { %s5167_s25 = scalar_select %p4762_p6, 1, 0 }
   0xd   : > { %p4767_p8 = pnand %p3485_p5, %p163_p7  ;;  %s175_s28 = sshll.u32 %s4685_s27, 4  ;;  %s4771_s28 = int_to_ptr.vmem [resolvable:$true] %s175_s28 }
   0xe   : > { %s4686_s30 = smov [#allocation8]   ;;  %s4527_s9 = scalar_lea.hbm %s5158_s1, 27648 }
   0xf   : > { %p4032_p9 = pneg %p4767_p8  ;;  %s188_s6 = sshll.u32 %s4686_s30, 4  ;;  %s4782_s6 = int_to_ptr.vmem [resolvable:$true] %s188_s6 }
  0x10   : > { %p4528_p12 = scmp.ne.s32.totalorder %s5158_s1, %s4527_s9  ;;  %p4534_p5 = scmp.lt.u32.totalorder %s4527_s9, %s5158_s1 }
  0x11   : > { %p4778_p11 = pnand %p4032_p9, %p5163_p1 }
  0x13   : > { %p4529_p13 = pneg %p4778_p11 }
  0x15   : > { %p4530_p0 = pnand %p4529_p13, %p4528_p12 }
  0x17   : > { %p4531_p3 = pneg %p4530_p0 }
  0x19   : > { %p4536_p7 = pnand %p4534_p5, %p4531_p3 }
  0x1b   : > { %4539 = shalt.err (!%p4536_p7)
}
  0x1c   : > { %s4540_s14 = scalar_lea.vmem %s4771_s28, 27648  ;;  %p4548_p2 = scmp.lt.s32.totalorder %s4771_s28, %s4771_s28 }
  0x1d   : > { %p4541_p9 = scmp.ne.s32.totalorder %s4771_s28, %s4540_s14  ;;  %p4549_p12 = scmp.lt.s32.totalorder %s4540_s14, %s4540_s14 }
  0x1f   : > { %p4543_p10 = pnand %p4541_p9, %p4529_p13  ;;  %p4550_p0 = por %p4549_p12, %p4548_p2 }
  0x21   : > { %p4544_p1 = pneg %p4543_p10 }
  0x23   : > { %p4551_p6 = pnand %p4550_p0, %p4544_p1 }
  0x25   : > { %4554 = shalt.err (!%p4551_p6)
}
  0x26   : > { %s4687_s15 = smov 576   ;;  %s4688_s16 = smov 36  }
  0x27   : > { %4035 = dma.hbm_to_vmem [thread:$0]  (!%p4778_p11), %s5158_s1, 27648, %s4771_s28, [#allocation7], %s4687_s15, %s4687_s15, %s4688_s16  }
  0x28   : > { %s4555_s7 = scalar_lea.hbm %s5159_s2, 9216 }
  0x29   : > { %p4556_p2 = scmp.ne.s32.totalorder %s5159_s2, %s4555_s7  ;;  %p4562_p10 = scmp.lt.u32.totalorder %s4555_s7, %s5159_s2 }
  0x2b   : > { %p4558_p1 = pnand %p4556_p2, %p4529_p13 }
  0x2d   : > { %p4559_p6 = pneg %p4558_p1 }
  0x2f   : > { %p4564_p3 = pnand %p4562_p10, %p4559_p6 }
  0x31   : > { %4567 = shalt.err (!%p4564_p3)
}
  0x32   : > { %s4568_s28 = scalar_lea.vmem %s4782_s6, 9216  ;;  %p4576_p12 = scmp.lt.s32.totalorder %s4782_s6, %s4782_s6 }
  0x33   : > { %p4569_p5 = scmp.ne.s32.totalorder %s4782_s6, %s4568_s28  ;;  %p4577_p0 = scmp.lt.s32.totalorder %s4568_s28, %s4568_s28 }
  0x35   : > { %p4571_p7 = pnand %p4569_p5, %p4529_p13  ;;  %p4578_p2 = por %p4577_p0, %p4576_p12 }
  0x37   : > { %p4572_p9 = pneg %p4571_p7 }
  0x39   : > { %p4579_p1 = pnand %p4578_p2, %p4572_p9 }
  0x3b   : > { %4582 = shalt.err (!%p4579_p1)
}
  0x3c   : > { %s4689_s12 = smov 192   ;;  %s4690_s13 = smov 12  }
  0x3d   : > { %4038 = dma.hbm_to_vmem [thread:$0]  (!%p4778_p11), %s5159_s2, 9216, %s4782_s6, [#allocation7], %s4689_s12, %s4689_s12, %s4690_s13  }
  0x3e   : > { %s4837_s16 = sadd.s32 1, %s4683_s21   ;;  %s29_s23 = sadd.s32 1, %s4679_s20 }
  0x3f   : > { %s26_s17 = ssub.s32 %s4683_s21, %s4837_s16  ;;  %p36_p6 = scmp.ne.s32.totalorder %s4679_s20, %s4675_s19 }
  0x40   : > { %p27_p13 = scmp.eq.s32.totalorder %s26_s17, 0  ;;  %p37_p10 = scmp.eq.s32.totalorder %s4683_s21, 0 }
  0x41   : > { %p5170_p5 = scmp.eq.s32.totalorder %s4748_s22, 1  ;;  %p4049_p9 = scmp.lt.s32.totalorder %s4683_s21, 2 }
  0x42   : > { %s4846_s27 = scalar_select %p27_p13, %s4679_s20, %s29_s23  }
  0x43   : > { %p38_p3 = por %p37_p10, %p36_p6  ;;  %p4850_p7 = por %p5170_p5, %p36_p6 }
  0x44   : > { %s208_s29 = sand.u32 1, %s4679_s20   ;;  %s4017_s6 = smul.u32 384, %s4683_s21 }
  0x45   : > { %s5171_s30 = scalar_select %p4850_p7, 1, 0 }
  0x46   : > { %s4016_s7 = smul.u32 24, %s208_s29  ;;  %p4857_p11 = pnand %p4049_p9, %p38_p3 }
  0x47   : > { %s4864_s11 = scalar_lea.hbm %s5157_s0, %s4017_s6  ;;  %s209_s13 = scalar_lea.sflag [#allocation4], %s208_s29 }
  0x48   : > { %s212_s28 = scalar_lea.vmem [#allocation3], %s4016_s7  ;;  %s4583_s14 = scalar_lea.hbm %s4864_s11, 384 }
  0x49   : > { %s220_s12 = sshll.u32 %s212_s28, 4  ;;  %p4584_p12 = scmp.ne.s32.totalorder %s4864_s11, %s4583_s14  ;;  %s4866_s12 = int_to_ptr.vmem [resolvable:$true] %s220_s12 }
  0x4a   : > { %p4585_p0 = pneg %p4857_p11  ;;  %s4588_s23 = scalar_lea.hbm %s5157_s0, 768 }
  0x4b   : > { %p4589_p13 = scmp.lt.u32.totalorder %s4864_s11, %s5157_s0  ;;  %p4590_p6 = scmp.lt.u32.totalorder %s4588_s23, %s4583_s14 }
  0x4c   : > { %p4586_p2 = pnand %p4585_p0, %p4584_p12  ;;  %p4592_p3 = scmp.lt.u32.totalorder %s4583_s14, %s4864_s11 }
  0x4d   : > { %p4591_p10 = por %p4590_p6, %p4589_p13 }
  0x4e   : > { %p4587_p1 = pneg %p4586_p2 }
  0x4f   : > { %p4593_p5 = por %p4592_p3, %p4591_p10 }
  0x51   : > { %p4594_p9 = pnand %p4593_p5, %p4587_p1 }
  0x53   : > { %4597 = shalt.err (!%p4594_p9)
}
  0x54   : > { %s4598_s29 = scalar_lea.vmem %s4866_s12, 384  ;;  %s4691_s7 = smov [#allocation3]  }
  0x55   : > { %p4599_p12 = scmp.ne.s32.totalorder %s4866_s12, %s4598_s29  ;;  %s4603_s10 = sshll.u32 %s4691_s7, 4  ;;  %s4604_s10 = int_to_ptr.vmem [resolvable:$false] %s4603_s10 }
  0x56   : > { %s4605_s28 = scalar_lea.vmem %s4604_s10, 768  ;;  %p4606_p4 = scmp.lt.s32.totalorder %s4866_s12, %s4604_s10 }
  0x57   : > { %p4601_p2 = pnand %p4599_p12, %p4585_p0  ;;  %p4607_p13 = scmp.lt.s32.totalorder %s4605_s28, %s4598_s29 }
  0x59   : > { %p4602_p7 = pneg %p4601_p2  ;;  %p4608_p6 = por %p4607_p13, %p4606_p4 }
  0x5b   : > { %p4609_p10 = pnand %p4608_p6, %p4602_p7 }
  0x5d   : > { %4612 = shalt.err (!%p4609_p10)
}
  0x5e   : > { %4042 = dma.hbm_to_vmem [thread:$0]  (!%p4857_p11), %s4864_s11, 384, %s4866_s12, %s209_s13  }
  0x5f   : > { %229 = sbr.rel (%p4767_p8) target bundleno = 1827 (0x723), region = 40  ;;  %s4896_s14 = sand.u32 (!%p4767_p8), 1, %s4675_s19  }
  0x60   : > { %s4018_s15 = smul.u32 (!%p4767_p8), 24, %s4896_s14  ;;  %s232_s17 = scalar_lea.sflag (!%p4767_p8), [#allocation4], %s4896_s14 }
  0x61   : > { %p5173_p4 = scmp.ne.s32.totalorder (!%p4767_p8), %s5166_s24, 0 }
  0x62   : > { %s4902_s23 = scalar_lea.vmem (!%p4767_p8), [#allocation3], %s4018_s15 }
  0x66   : > { %4658 = dma.done.wait (%p5173_p4), %s232_s17, 384  }
  0x67   : > { %4660 = vsyncadd (%p5173_p4), %s232_s17, 4294966912  ;;  %p5174_p7 = scmp.eq.s32.totalorder %s4748_s22, 0 }
  0x69   : > { %4662 = dma.done.wait (%p5174_p7), [#allocation7], 36864   ;;  %p5175_p8 = pmov %p5174_p7 }
  0x6a   : > { %v4095_v0 = vld [vmem:[#allocation6 + $0x4] ss:$36 sps:$4 sm:$0xff]   ;;  %v4097_v1 = vld [vmem:[#allocation6 + $0xc] ss:$36 sps:$4 sm:$0xff]   ;;  %v4103_v5 = vld [vmem:[#allocation6 + $0x54] ss:$36 sps:$4 sm:$0xff]  }
  0x6b   : > { %4664 = vsyncadd (%p5175_p8), [#allocation7], 4294930432  ;;  %1621 = vmatprep.subr.bf16.mxu0 %v4095_v0  ;;  %v4099_v2 = vld [vmem:[#allocation6] ss:$36 sps:$4 sm:$0xff]   ;;  %v4100_v3 = vld [vmem:[#allocation6 + $0x8] ss:$36 sps:$4 sm:$0xff]   ;;  %1703 = vmatprep.subr.bf16.mxu1 %v4097_v1 }
  0x6c   : > { %v4101_v4 = vld [vmem:[#allocation6 + $0x4c] ss:$36 sps:$4 sm:$0xff]   ;;  %1622 = vmatpush1.bf16.msra.mxu0 %v4099_v2  ;;  %1704 = vmatpush1.bf16.msra.mxu1 %v4100_v3  ;;  %v4107_v8 = vld [vmem:[#allocation6 + $0x94] ss:$36 sps:$4 sm:$0xff]   ;;  %v4109_v9 = vld [vmem:[#allocation6 + $0x9c] ss:$36 sps:$4 sm:$0xff]  }
  0x6d   : > { %v4105_v6 = vld [vmem:[#allocation6 + $0x48] ss:$36 sps:$4 sm:$0xff]   ;;  %1623 = vmatprep.subr.bf16.mxu0 %v4101_v4  ;;  %v4106_v7 = vld [vmem:[#allocation6 + $0x50] ss:$36 sps:$4 sm:$0xff]   ;;  %1705 = vmatprep.subr.bf16.mxu1 %v4103_v5  ;;  %v4112_v11 = vld [vmem:[#allocation6 + $0x98] ss:$36 sps:$4 sm:$0xff]  }
  0x6e   : > { %v4111_v10 = vld [vmem:[#allocation6 + $0x90] ss:$36 sps:$4 sm:$0xff]   ;;  %v4113_v12 = vld [vmem:[#allocation6 + $0xdc] ss:$36 sps:$4 sm:$0xff]   ;;  %v4115_v13 = vld [vmem:[#allocation6 + $0xe4] ss:$36 sps:$4 sm:$0xff]  }
  0x6f   : > { %v4117_v14 = vld [vmem:[#allocation6 + $0xd8] ss:$36 sps:$4 sm:$0xff]   ;;  %v4118_v15 = vld [vmem:[#allocation6 + $0xe0] ss:$36 sps:$4 sm:$0xff]   ;;  %v4121_v17 = vld [vmem:[#allocation6 + $0x12c] ss:$36 sps:$4 sm:$0xff]  }
  0x70   : > { %1624 = vmatpush1.bf16.msra.mxu0 %v4105_v6  ;;  %1706 = vmatpush1.bf16.msra.mxu1 %v4106_v7  ;;  %v4119_v16 = vld [vmem:[#allocation6 + $0x124] ss:$36 sps:$4 sm:$0xff]   ;;  %v4125_v20 = vld [vmem:[#allocation6 + $0x16c] ss:$36 sps:$4 sm:$0xff]   ;;  %v4127_v21 = vld [vmem:[#allocation6 + $0x174] ss:$36 sps:$4 sm:$0xff]  }
  0x71   : > { %1625 = vmatprep.subr.bf16.mxu0 %v4107_v8  ;;  %1707 = vmatprep.subr.bf16.mxu1 %v4109_v9  ;;  %v4123_v18 = vld [vmem:[#allocation6 + $0x120] ss:$36 sps:$4 sm:$0xff]   ;;  %v4124_v19 = vld [vmem:[#allocation6 + $0x128] ss:$36 sps:$4 sm:$0xff]   ;;  %v4130_v23 = vld [vmem:[#allocation6 + $0x170] ss:$36 sps:$4 sm:$0xff]  }
  0x72   : > { %v4129_v22 = vld [vmem:[#allocation6 + $0x168] ss:$36 sps:$4 sm:$0xff]   ;;  %v4131_v24 = vld [vmem:[#allocation6 + $0x1b4] ss:$36 sps:$4 sm:$0xff]   ;;  %v4133_v25 = vld [vmem:[#allocation6 + $0x1bc] ss:$36 sps:$4 sm:$0xff]  }
  0x73   : > { %v4135_v26 = vld [vmem:[#allocation6 + $0x1b0] ss:$36 sps:$4 sm:$0xff]   ;;  %v4136_v27 = vld [vmem:[#allocation6 + $0x1b8] ss:$36 sps:$4 sm:$0xff]   ;;  %v4139_v29 = vld [vmem:[#allocation6 + $0x204] ss:$36 sps:$4 sm:$0xff]  }
  0x74   : > { %1626 = vmatpush1.bf16.msra.mxu0 %v4111_v10  ;;  %1708 = vmatpush1.bf16.msra.mxu1 %v4112_v11  ;;  %v4137_v28 = vld [vmem:[#allocation6 + $0x1fc] ss:$36 sps:$4 sm:$0xff]   ;;  %v4143_v32 = vld [vmem:[#allocation6 + $0x244] ss:$36 sps:$4 sm:$0xff]   ;;  %v4145_v33 = vld [vmem:[#allocation6 + $0x24c] ss:$36 sps:$4 sm:$0xff]  }
  0x75   : > { %1627 = vmatprep.subr.bf16.mxu0 %v4113_v12  ;;  %1709 = vmatprep.subr.bf16.mxu1 %v4115_v13  ;;  %v4141_v30 = vld [vmem:[#allocation6 + $0x1f8] ss:$36 sps:$4 sm:$0xff]   ;;  %v4142_v31 = vld [vmem:[#allocation6 + $0x200] ss:$36 sps:$4 sm:$0xff]   ;;  %v4148_v35 = vld [vmem:[#allocation6 + $0x248] ss:$36 sps:$4 sm:$0xff]  }
  0x76   : > { %v4147_v34 = vld [vmem:[#allocation6 + $0x240] ss:$36 sps:$4 sm:$0xff]   ;;  %v4149_v36 = vld [vmem:[#allocation6 + $0x28c] ss:$36 sps:$4 sm:$0xff]   ;;  %v4151_v37 = vld [vmem:[#allocation6 + $0x294] ss:$36 sps:$4 sm:$0xff]  }
  0x77   : > { %v4153_v38 = vld [vmem:[#allocation6 + $0x288] ss:$36 sps:$4 sm:$0xff]   ;;  %v4154_v39 = vld [vmem:[#allocation6 + $0x290] ss:$36 sps:$4 sm:$0xff]   ;;  %v4157_v41 = vld [vmem:[#allocation6 + $0x2dc] ss:$36 sps:$4 sm:$0xff]  }
  0x78   : > { %1628 = vmatpush1.bf16.msra.mxu0 %v4117_v14  ;;  %1710 = vmatpush1.bf16.msra.mxu1 %v4118_v15  ;;  %v4155_v40 = vld [vmem:[#allocation6 + $0x2d4] ss:$36 sps:$4 sm:$0xff]   ;;  %v4161_v44 = vld [vmem:[#allocation6 + $0x31c] ss:$36 sps:$4 sm:$0xff]   ;;  %v4163_v45 = vld [vmem:[#allocation6 + $0x324] ss:$36 sps:$4 sm:$0xff]  }
  0x79   : > { %1629 = vmatprep.subr.bf16.mxu0 %v4119_v16  ;;  %1711 = vmatprep.subr.bf16.mxu1 %v4121_v17  ;;  %v4159_v42 = vld [vmem:[#allocation6 + $0x2d0] ss:$36 sps:$4 sm:$0xff]   ;;  %v4160_v43 = vld [vmem:[#allocation6 + $0x2d8] ss:$36 sps:$4 sm:$0xff]   ;;  %v4166_v49 = vld [vmem:[#allocation6 + $0x320] ss:$36 sps:$4 sm:$0xff]  }
  0x7a   : > { %v272_v46 = vld [vmem:[%s4902_s23 + $0x8] sm:$0xff]  ;;  %v4167_v50 = vld [vmem:[#allocation6 + $0x364] ss:$36 sps:$4 sm:$0xff]   ;;  %v4692_v14 = vmov 0   ;;  %vm4694_vm0 = vmmov 0   ;;  %vm2033_vm1 = vcmask 523264  }
  0x7b   : > { %v4165_v47 = vld [vmem:[#allocation6 + $0x318] ss:$36 sps:$4 sm:$0xff]   ;;  %v4913_v48 = vpack.c.bf16 %v272_v46, %v272_v46  ;;  %v4169_v51 = vld [vmem:[#allocation6 + $0x36c] ss:$36 sps:$4 sm:$0xff]   ;;  %v4171_v52 = vld [vmem:[#allocation6 + $0x360] ss:$36 sps:$4 sm:$0xff]  }
  0x7c   : > { %1630 = vmatpush1.bf16.msra.mxu0 %v4123_v18  ;;  %1712 = vmatpush1.bf16.msra.mxu1 %v4124_v19  ;;  %v4172_v53 = vld [vmem:[#allocation6 + $0x368] ss:$36 sps:$4 sm:$0xff]   ;;  %v4175_v55 = vld [vmem:[#allocation6 + $0x3b4] ss:$36 sps:$4 sm:$0xff]   ;;  %v4181_v59 = vld [vmem:[#allocation6 + $0x3fc] ss:$36 sps:$4 sm:$0xff]  }
  0x7d   : > { %1631 = vmatprep.subr.bf16.mxu0 %v4125_v20  ;;  %1713 = vmatprep.subr.bf16.mxu1 %v4127_v21  ;;  %v4173_v54 = vld [vmem:[#allocation6 + $0x3ac] ss:$36 sps:$4 sm:$0xff]   ;;  %v4179_v58 = vld [vmem:[#allocation6 + $0x3f4] ss:$36 sps:$4 sm:$0xff]   ;;  %v4185_v62 = vld [vmem:[#allocation6 + $0x43c] ss:$36 sps:$4 sm:$0xff]  }
  0x7e   : > { %1653 = vmatprep.mubr.bf16.mxu0 %v4913_v48  ;;  %1735 = vmatprep.mubr.bf16.mxu1 %v4913_v48  ;;  %v4177_v56 = vld [vmem:[#allocation6 + $0x3a8] ss:$36 sps:$4 sm:$0xff]   ;;  %v4178_v57 = vld [vmem:[#allocation6 + $0x3b0] ss:$36 sps:$4 sm:$0xff]   ;;  %v4184_v61 = vld [vmem:[#allocation6 + $0x3f8] ss:$36 sps:$4 sm:$0xff]  }
  0x7f   : > { %v4183_v60 = vld [vmem:[#allocation6 + $0x3f0] ss:$36 sps:$4 sm:$0xff]   ;;  %v4187_v63 = vld [vmem:[#allocation6 + $0x444] ss:$36 sps:$4 sm:$0xff]   ;;  %v4189_v0 = vld [vmem:[#allocation6 + $0x438] ss:$36 sps:$4 sm:$0xff]  }
  0x80   : > { %1632 = vmatpush1.bf16.msra.mxu0 %v4129_v22  ;;  %1714 = vmatpush1.bf16.msra.mxu1 %v4130_v23  ;;  %v4190_v1 = vld [vmem:[#allocation6 + $0x440] ss:$36 sps:$4 sm:$0xff]   ;;  %v271_v2 = vld [vmem:[%s4902_s23] sm:$0xff]  ;;  %v4206_v16 = vld [vmem:[#allocation6 + $0x518] ss:$36 sps:$4 sm:$0xff]   ;;  %s4695_s24 = smov 64  }
  0x81   : > { %1633 = vmatprep.subr.bf16.mxu0 %v4131_v24  ;;  %1715 = vmatprep.subr.bf16.mxu1 %v4133_v25  ;;  %v4193_v3 = vld [vmem:[#allocation6 + $0x484] ss:$36 sps:$4 sm:$0xff]   ;;  %v4196_v4 = vld [vmem:[#allocation6 + $0x48c] ss:$36 sps:$4 sm:$0xff]   ;;  %v4918_v5 = vpack.c.bf16 %v271_v2, %v271_v2  ;;  %v4202_v9 = vld [vmem:[#allocation6 + $0x4d4] ss:$36 sps:$4 sm:$0xff]  }
  0x82   : > { %v4191_v6 = vld [vmem:[#allocation6 + $0x480] ss:$36 sps:$4 sm:$0xff]   ;;  %v4194_v7 = vld [vmem:[#allocation6 + $0x488] ss:$36 sps:$4 sm:$0xff]   ;;  %v4200_v11 = vld [vmem:[#allocation6 + $0x4d0] ss:$36 sps:$4 sm:$0xff]  }
  0x83   : > { %v4199_v8 = vld [vmem:[#allocation6 + $0x4cc] ss:$36 sps:$4 sm:$0xff]   ;;  %v4205_v12 = vld [vmem:[#allocation6 + $0x514] ss:$36 sps:$4 sm:$0xff]   ;;  %v4208_v13 = vld [vmem:[#allocation6 + $0x51c] ss:$36 sps:$4 sm:$0xff]  }
  0x84   : > { %1634 = vmatpush1.bf16.msra.mxu0 %v4135_v26  ;;  %1716 = vmatpush1.bf16.msra.mxu1 %v4136_v27  ;;  %v4197_v10 = vld [vmem:[#allocation6 + $0x4c8] ss:$36 sps:$4 sm:$0xff]   ;;  %v4203_v15 = vld [vmem:[#allocation6 + $0x510] ss:$36 sps:$4 sm:$0xff]   ;;  %v4211_v17 = vld [vmem:[#allocation6 + $0x55c] ss:$36 sps:$4 sm:$0xff]  }
  0x85   : > { %1635 = vmatprep.subr.bf16.mxu0 %v4137_v28  ;;  %1717 = vmatprep.subr.bf16.mxu1 %v4139_v29  ;;  %v4214_v18 = vld [vmem:[#allocation6 + $0x564] ss:$36 sps:$4 sm:$0xff]   ;;  %v4209_v19 = vld [vmem:[#allocation6 + $0x558] ss:$36 sps:$4 sm:$0xff]   ;;  %v4220_v22 = vld [vmem:[#allocation6 + $0x5ac] ss:$36 sps:$4 sm:$0xff]  }
  0x86   : > { %v4212_v20 = vld [vmem:[#allocation6 + $0x560] ss:$36 sps:$4 sm:$0xff]   ;;  %v4218_v24 = vld [vmem:[#allocation6 + $0x5a8] ss:$36 sps:$4 sm:$0xff]   ;;  %v4226_v26 = vld [vmem:[#allocation6 + $0x5f4] ss:$36 sps:$4 sm:$0xff]  }
  0x87   : > { %v4217_v21 = vld [vmem:[#allocation6 + $0x5a4] ss:$36 sps:$4 sm:$0xff]   ;;  %v4223_v25 = vld [vmem:[#allocation6 + $0x5ec] ss:$36 sps:$4 sm:$0xff]   ;;  %v4229_v29 = vld [vmem:[#allocation6 + $0x634] ss:$36 sps:$4 sm:$0xff]  }
  0x88   : > { %1636 = vmatpush1.bf16.msra.mxu0 %v4141_v30  ;;  %1718 = vmatpush1.bf16.msra.mxu1 %v4142_v31  ;;  %v4215_v23 = vld [vmem:[#allocation6 + $0x5a0] ss:$36 sps:$4 sm:$0xff]   ;;  %v4221_v27 = vld [vmem:[#allocation6 + $0x5e8] ss:$36 sps:$4 sm:$0xff]   ;;  %v4224_v28 = vld [vmem:[#allocation6 + $0x5f0] ss:$36 sps:$4 sm:$0xff]  }
  0x89   : > { %1637 = vmatprep.subr.bf16.mxu0 %v4143_v32  ;;  %1719 = vmatprep.subr.bf16.mxu1 %v4145_v33  ;;  %v4232_v30 = vld [vmem:[#allocation6 + $0x63c] ss:$36 sps:$4 sm:$0xff]   ;;  %v4227_v31 = vld [vmem:[#allocation6 + $0x630] ss:$36 sps:$4 sm:$0xff]   ;;  %v4247_v46 = vld [vmem:[#allocation6 + $0xa4] ss:$36 sps:$4 sm:$0xff]  }
  0x8a   : > { %v4230_v32 = vld [vmem:[#allocation6 + $0x638] ss:$36 sps:$4 sm:$0xff]   ;;  %v4257_v2 = vld [vmem:[#allocation6 + $0x1c0] ss:$36 sps:$4 sm:$0xff]   ;;  %vm2094_vm2 = vcmask 1043456   ;;  %vm2080_vm3 = vcmask 64512  }
  0x8b   : > { %v4235_v33 = vld [vmem:[#allocation6 + $0x67c] ss:$36 sps:$4 sm:$0xff]   ;;  %vm2258_vm4 = vcmask 1048064   ;;  %s4019_s13 = smul.u32 384, %s4748_s22  ;;  %s269_s6 = scalar_lea.vmem [#allocation9], %s4018_s15 }
  0x8c   : > { %1638 = vmatpush1.bf16.msra.mxu0 %v4147_v34  ;;  %1720 = vmatpush1.bf16.msra.mxu1 %v4148_v35  ;;  %v4238_v34 = vld [vmem:[#allocation6 + $0x684] ss:$36 sps:$4 sm:$0xff]   ;;  %v4233_v35 = vld [vmem:[#allocation6 + $0x678] ss:$36 sps:$4 sm:$0xff]   ;;  %s3395_s9 = sshll.u32 %s269_s6, 4  ;;  %s3381_s22 = scalar_lea.sflag [#allocation5], %s4896_s14  ;;  %s5115_s9 = int_to_ptr.vmem [resolvable:$true] %s3395_s9 }
  0x8d   : > { %1639 = vmatprep.subr.bf16.mxu0 %v4149_v36  ;;  %1721 = vmatprep.subr.bf16.mxu1 %v4151_v37  ;;  %v4236_v36 = vld [vmem:[#allocation6 + $0x680] ss:$36 sps:$4 sm:$0xff]   ;;  %s5113_s10 = scalar_lea.hbm %s5162_s5, %s4019_s13  ;;  %s4613_s28 = scalar_lea.vmem %s5115_s9, 384 }
  0x8e   : > { %v273_v37 = vld [vmem:[%s4902_s23 + $0x10] sm:$0xff]  ;;  %p4614_p11 = scmp.ne.s32.totalorder %s5115_s9, %s4613_s28  ;;  %p5176_p0 = scmp.ne.s32.totalorder %s5171_s30, 0 }
  0x8f   : > { %s4696_s15 = smov [#allocation9]  }
  0x90   : > { %1640 = vmatpush1.bf16.msra.mxu0 %v4153_v38  ;;  %1722 = vmatpush1.bf16.msra.mxu1 %v4154_v39  ;;  %v4241_v38 = vld [vmem:[#allocation6 + $0x14] ss:$36 sps:$4 sm:$0xff]   ;;  %v4280_v39 = vld [vmem:[#allocation6 + $0x1c] ss:$36 sps:$4 sm:$0xff]   ;;  %p4615_p1 = pnand %p4614_p11, %p5176_p0  ;;  %s4617_s17 = sshll.u32 %s4696_s15, 4  ;;  %s4618_s17 = int_to_ptr.vmem [resolvable:$false] %s4617_s17 }
  0x91   : > { %1641 = vmatprep.subr.bf16.mxu0 %v4155_v40  ;;  %1723 = vmatprep.subr.bf16.mxu1 %v4157_v41  ;;  %v4925_v40 = vpack.c.bf16 %v273_v37, %v273_v37  ;;  %v4239_v41 = vld [vmem:[#allocation6 + $0x10] ss:$36 sps:$4 sm:$0xff]   ;;  %s4619_s23 = scalar_lea.vmem %s4618_s17, 768  ;;  %p4620_p5 = scmp.lt.s32.totalorder %s5115_s9, %s4618_s17 }
  0x92   : > { %v4295_v37 = vld [vmem:[#allocation6 + $0x44c] ss:$36 sps:$4 sm:$0xff]   ;;  %p4616_p3 = pneg %p4615_p1  ;;  %p4621_p9 = scmp.lt.s32.totalorder %s4619_s23, %s4613_s28 }
  0x94   : > { %1642 = vmatpush1.bf16.msra.mxu0 %v4159_v42  ;;  %1724 = vmatpush1.bf16.msra.mxu1 %v4160_v43  ;;  %v4244_v42 = vld [vmem:[#allocation6 + $0x5c] ss:$36 sps:$4 sm:$0xff]   ;;  %p4622_p12 = por %p4621_p9, %p4620_p5 }
  0x95   : > { %1643 = vmatprep.subr.bf16.mxu0 %v4161_v44  ;;  %1725 = vmatprep.subr.bf16.mxu1 %v4163_v45  ;;  %v4278_v43 = vld [vmem:[#allocation6 + $0x18] ss:$36 sps:$4 sm:$0xff]   ;;  %v4286_v44 = vld [vmem:[#allocation6 + $0x64] ss:$36 sps:$4 sm:$0xff]  }
  0x96   : > { %v4242_v45 = vld [vmem:[#allocation6 + $0x58] ss:$36 sps:$4 sm:$0xff]   ;;  %p4623_p2 = pnand %p4622_p12, %p4616_p3 }
  0x98   : > { %1644 = vmatpush1.bf16.msra.mxu0 %v4165_v47  ;;  %1726 = vmatpush1.bf16.msra.mxu1 %v4166_v49  ;;  %v4284_v47 = vld [vmem:[#allocation6 + $0x60] ss:$36 sps:$4 sm:$0xff]   ;;  %v4292_v49 = vld [vmem:[#allocation6 + $0xac] ss:$36 sps:$4 sm:$0xff]  }
  0x99   : > { %1645 = vmatprep.subr.bf16.mxu0 %v4167_v50  ;;  %1727 = vmatprep.subr.bf16.mxu1 %v4169_v51  ;;  %v4245_v50 = vld [vmem:[#allocation6 + $0xa0] ss:$36 sps:$4 sm:$0xff]   ;;  %v4250_v51 = vld [vmem:[#allocation6 + $0xec] ss:$36 sps:$4 sm:$0xff]  }
  0x9c   : > { %1646 = vmatpush1.bf16.msra.mxu0 %v4171_v52  ;;  %1728 = vmatpush1.bf16.msra.mxu1 %v4172_v53  ;;  %v4290_v52 = vld [vmem:[#allocation6 + $0xa8] ss:$36 sps:$4 sm:$0xff]   ;;  %v4298_v53 = vld [vmem:[#allocation6 + $0xf4] ss:$36 sps:$4 sm:$0xff]  }
  0x9d   : > { %1647 = vmatprep.subr.bf16.mxu0 %v4173_v54  ;;  %1729 = vmatprep.subr.bf16.mxu1 %v4175_v55  ;;  %v4248_v54 = vld [vmem:[#allocation6 + $0xe8] ss:$36 sps:$4 sm:$0xff]   ;;  %v4253_v55 = vld [vmem:[#allocation6 + $0x134] ss:$36 sps:$4 sm:$0xff]  }
  0xa0   : > { %1648 = vmatpush1.bf16.msra.mxu0 %v4177_v56  ;;  %1730 = vmatpush1.bf16.msra.mxu1 %v4178_v57  ;;  %v4296_v56 = vld [vmem:[#allocation6 + $0xf0] ss:$36 sps:$4 sm:$0xff]   ;;  %v4304_v57 = vld [vmem:[#allocation6 + $0x13c] ss:$36 sps:$4 sm:$0xff]  }
  0xa1   : > { %1649 = vmatprep.subr.bf16.mxu0 %v4179_v58  ;;  %1731 = vmatprep.subr.bf16.mxu1 %v4181_v59  ;;  %v4251_v58 = vld [vmem:[#allocation6 + $0x130] ss:$36 sps:$4 sm:$0xff]   ;;  %v4256_v59 = vld [vmem:[#allocation6 + $0x17c] ss:$36 sps:$4 sm:$0xff]  }
  0xa4   : > { %1650 = vmatpush1.bf16.msra.mxu0 %v4183_v60  ;;  %1732 = vmatpush1.bf16.msra.mxu1 %v4184_v61  ;;  %v4302_v60 = vld [vmem:[#allocation6 + $0x138] ss:$36 sps:$4 sm:$0xff]   ;;  %v4310_v61 = vld [vmem:[#allocation6 + $0x184] ss:$36 sps:$4 sm:$0xff]  }
  0xa5   : > { %1651 = vmatprep.subr.bf16.mxu0 %v4185_v62  ;;  %1733 = vmatprep.subr.bf16.mxu1 %v4187_v63  ;;  %v4254_v62 = vld [vmem:[#allocation6 + $0x178] ss:$36 sps:$4 sm:$0xff]   ;;  %v4259_v63 = vld [vmem:[#allocation6 + $0x1c4] ss:$36 sps:$4 sm:$0xff]  }
  0xa8   : > { %1652 = vmatpush1.bf16.msra.mxu0 %v4189_v0  ;;  %1734 = vmatpush1.bf16.msra.mxu1 %v4190_v1  ;;  %v4308_v0 = vld [vmem:[#allocation6 + $0x180] ss:$36 sps:$4 sm:$0xff]   ;;  %v4316_v1 = vld [vmem:[#allocation6 + $0x1cc] ss:$36 sps:$4 sm:$0xff]  }
  0xa9   : > { %1662 = vmatprep.subr.bf16.mxu0 %v4193_v3  ;;  %1744 = vmatprep.subr.bf16.mxu1 %v4196_v4  ;;  %v4262_v3 = vld [vmem:[#allocation6 + $0x20c] ss:$36 sps:$4 sm:$0xff]  }
  0xaa   : > { %v4314_v4 = vld [vmem:[#allocation6 + $0x1c8] ss:$36 sps:$4 sm:$0xff]  }
  0xab   : > { %1654 = vmatmul.mubr.bf16.vlgmr.msra.gmra.mrb[0].mxu0 %v4918_v5  ;;  %1736 = vmatmul.mubr.bf16.vlgmr.msra.gmra.mrb[0].mxu1 %v4918_v5 }
  0xac   : > { %1663 = vmatpush1.bf16.msra.mxu0 %v4191_v6  ;;  %1745 = vmatpush1.bf16.msra.mxu1 %v4194_v7  ;;  %v4322_v6 = vld [vmem:[#allocation6 + $0x214] ss:$36 sps:$4 sm:$0xff]   ;;  %v4260_v7 = vld [vmem:[#allocation6 + $0x208] ss:$36 sps:$4 sm:$0xff]  }
  0xad   : > { %1664 = vmatprep.subr.bf16.mxu0 %v4199_v8  ;;  %1746 = vmatprep.subr.bf16.mxu1 %v4202_v9  ;;  %v4265_v8 = vld [vmem:[#allocation6 + $0x254] ss:$36 sps:$4 sm:$0xff]  }
  0xae   : > { %1694 = vmatprep.mubr.bf16.mxu0 %v4692_v14  ;;  %1776 = vmatprep.mubr.bf16.mxu1 %v4692_v14  ;;  %v4320_v9 = vld [vmem:[#allocation6 + $0x210] ss:$36 sps:$4 sm:$0xff]  }
  0xb0   : > { %1665 = vmatpush1.bf16.msra.mxu0 %v4197_v10  ;;  %1747 = vmatpush1.bf16.msra.mxu1 %v4200_v11  ;;  %v4328_v10 = vld [vmem:[#allocation6 + $0x25c] ss:$36 sps:$4 sm:$0xff]   ;;  %v4263_v11 = vld [vmem:[#allocation6 + $0x250] ss:$36 sps:$4 sm:$0xff]  }
  0xb1   : > { %1666 = vmatprep.subr.bf16.mxu0 %v4205_v12  ;;  %1748 = vmatprep.subr.bf16.mxu1 %v4208_v13  ;;  %v4268_v12 = vld [vmem:[#allocation6 + $0x29c] ss:$36 sps:$4 sm:$0xff]  }
  0xb2   : > { %v4326_v13 = vld [vmem:[#allocation6 + $0x258] ss:$36 sps:$4 sm:$0xff]  }
  0xb4   : > { %1667 = vmatpush1.bf16.msra.mxu0 %v4203_v15  ;;  %1749 = vmatpush1.bf16.msra.mxu1 %v4206_v16  ;;  %v4334_v15 = vld [vmem:[#allocation6 + $0x2a4] ss:$36 sps:$4 sm:$0xff]   ;;  %v4266_v16 = vld [vmem:[#allocation6 + $0x298] ss:$36 sps:$4 sm:$0xff]  }
  0xb5   : > { %1668 = vmatprep.subr.bf16.mxu0 %v4211_v17  ;;  %1750 = vmatprep.subr.bf16.mxu1 %v4214_v18  ;;  %v4271_v17 = vld [vmem:[#allocation6 + $0x2e4] ss:$36 sps:$4 sm:$0xff]  }
  0xb6   : > { %v4332_v18 = vld [vmem:[#allocation6 + $0x2a0] ss:$36 sps:$4 sm:$0xff]  }
  0xb8   : > { %1669 = vmatpush1.bf16.msra.mxu0 %v4209_v19  ;;  %1751 = vmatpush1.bf16.msra.mxu1 %v4212_v20  ;;  %v4340_v19 = vld [vmem:[#allocation6 + $0x2ec] ss:$36 sps:$4 sm:$0xff]   ;;  %v4269_v20 = vld [vmem:[#allocation6 + $0x2e0] ss:$36 sps:$4 sm:$0xff]  }
  0xb9   : > { %1670 = vmatprep.subr.bf16.mxu0 %v4217_v21  ;;  %1752 = vmatprep.subr.bf16.mxu1 %v4220_v22  ;;  %v4274_v21 = vld [vmem:[#allocation6 + $0x32c] ss:$36 sps:$4 sm:$0xff]  }
  0xba   : > { %v4338_v22 = vld [vmem:[#allocation6 + $0x2e8] ss:$36 sps:$4 sm:$0xff]  }
  0xbc   : > { %1671 = vmatpush1.bf16.msra.mxu0 %v4215_v23  ;;  %1753 = vmatpush1.bf16.msra.mxu1 %v4218_v24  ;;  %v4346_v23 = vld [vmem:[#allocation6 + $0x334] ss:$36 sps:$4 sm:$0xff]   ;;  %v4272_v24 = vld [vmem:[#allocation6 + $0x328] ss:$36 sps:$4 sm:$0xff]  }
  0xbd   : > { %1672 = vmatprep.subr.bf16.mxu0 %v4223_v25  ;;  %1754 = vmatprep.subr.bf16.mxu1 %v4226_v26  ;;  %v4277_v25 = vld [vmem:[#allocation6 + $0x374] ss:$36 sps:$4 sm:$0xff]  }
  0xbe   : > { %v4344_v26 = vld [vmem:[#allocation6 + $0x330] ss:$36 sps:$4 sm:$0xff]  }
  0xc0   : > { %1673 = vmatpush1.bf16.msra.mxu0 %v4221_v27  ;;  %1755 = vmatpush1.bf16.msra.mxu1 %v4224_v28  ;;  %v4349_v27 = vld [vmem:[#allocation6 + $0x37c] ss:$36 sps:$4 sm:$0xff]   ;;  %v4275_v28 = vld [vmem:[#allocation6 + $0x370] ss:$36 sps:$4 sm:$0xff]  }
  0xc1   : > { %1674 = vmatprep.subr.bf16.mxu0 %v4229_v29  ;;  %1756 = vmatprep.subr.bf16.mxu1 %v4232_v30  ;;  %v4283_v29 = vld [vmem:[#allocation6 + $0x3bc] ss:$36 sps:$4 sm:$0xff]  }
  0xc2   : > { %v4347_v30 = vld [vmem:[#allocation6 + $0x378] ss:$36 sps:$4 sm:$0xff]  }
  0xc4   : > { %1675 = vmatpush1.bf16.msra.mxu0 %v4227_v31  ;;  %1757 = vmatpush1.bf16.msra.mxu1 %v4230_v32  ;;  %v4352_v31 = vld [vmem:[#allocation6 + $0x3c4] ss:$36 sps:$4 sm:$0xff]   ;;  %v4281_v32 = vld [vmem:[#allocation6 + $0x3b8] ss:$36 sps:$4 sm:$0xff]  }
  0xc5   : > { %1676 = vmatprep.subr.bf16.mxu0 %v4235_v33  ;;  %1758 = vmatprep.subr.bf16.mxu1 %v4238_v34  ;;  %v4289_v33 = vld [vmem:[#allocation6 + $0x404] ss:$36 sps:$4 sm:$0xff]  }
  0xc6   : > { %v4350_v34 = vld [vmem:[#allocation6 + $0x3c0] ss:$36 sps:$4 sm:$0xff]  }
  0xc8   : > { %1677 = vmatpush1.bf16.msra.mxu0 %v4233_v35  ;;  %1759 = vmatpush1.bf16.msra.mxu1 %v4236_v36  ;;  %v4355_v35 = vld [vmem:[#allocation6 + $0x40c] ss:$36 sps:$4 sm:$0xff]   ;;  %v4287_v36 = vld [vmem:[#allocation6 + $0x400] ss:$36 sps:$4 sm:$0xff]  }
  0xc9   : > { %1785 = vmatprep.subr.bf16.mxu0 %v4241_v38  ;;  %1867 = vmatprep.subr.bf16.mxu1 %v4280_v39  ;;  %v4353_v38 = vld [vmem:[#allocation6 + $0x408] ss:$36 sps:$4 sm:$0xff]   ;;  %v4358_v39 = vld [vmem:[#allocation6 + $0x454] ss:$36 sps:$4 sm:$0xff]  }
  0xcb   : > { %1695 = vmatmul.mubr.bf16.vlgmr.msra.gmra.mrb[0].mxu0 %v4925_v40  ;;  %1777 = vmatmul.mubr.bf16.vlgmr.msra.gmra.mrb[0].mxu1 %v4925_v40 }
  0xcc   : > { %1786 = vmatpush1.bf16.msra.mxu0 %v4239_v41  ;;  %1868 = vmatpush1.bf16.msra.mxu1 %v4278_v43  ;;  %v4293_v41 = vld [vmem:[#allocation6 + $0x448] ss:$36 sps:$4 sm:$0xff]   ;;  %v4301_v43 = vld [vmem:[#allocation6 + $0x494] ss:$36 sps:$4 sm:$0xff]  }
  0xcd   : > { %1787 = vmatprep.subr.bf16.mxu0 %v4244_v42  ;;  %1869 = vmatprep.subr.bf16.mxu1 %v4286_v44  ;;  %v4356_v42 = vld [vmem:[#allocation6 + $0x450] ss:$36 sps:$4 sm:$0xff]   ;;  %v4361_v44 = vld [vmem:[#allocation6 + $0x49c] ss:$36 sps:$4 sm:$0xff]  }
  0xce   : > { %1817 = vmatprep.mubr.bf16.mxu0 %v4913_v48  ;;  %1899 = vmatprep.mubr.bf16.mxu1 %v4913_v48 }
  0xd0   : > { %1788 = vmatpush1.bf16.msra.mxu0 %v4242_v45  ;;  %1870 = vmatpush1.bf16.msra.mxu1 %v4284_v47  ;;  %v4299_v45 = vld [vmem:[#allocation6 + $0x490] ss:$36 sps:$4 sm:$0xff]   ;;  %v4359_v47 = vld [vmem:[#allocation6 + $0x498] ss:$36 sps:$4 sm:$0xff]  }
  0xd1   : > { %1789 = vmatprep.subr.bf16.mxu0 %v4247_v46  ;;  %1871 = vmatprep.subr.bf16.mxu1 %v4292_v49  ;;  %v4307_v46 = vld [vmem:[#allocation6 + $0x4dc] ss:$36 sps:$4 sm:$0xff]   ;;  %v4364_v49 = vld [vmem:[#allocation6 + $0x4e4] ss:$36 sps:$4 sm:$0xff]  }
  0xd4   : > { %1790 = vmatpush1.bf16.msra.mxu0 %v4245_v50  ;;  %1872 = vmatpush1.bf16.msra.mxu1 %v4290_v52  ;;  %v4305_v50 = vld [vmem:[#allocation6 + $0x4d8] ss:$36 sps:$4 sm:$0xff]   ;;  %v4362_v52 = vld [vmem:[#allocation6 + $0x4e0] ss:$36 sps:$4 sm:$0xff]  }
  0xd5   : > { %1791 = vmatprep.subr.bf16.mxu0 %v4250_v51  ;;  %1873 = vmatprep.subr.bf16.mxu1 %v4298_v53  ;;  %v4313_v51 = vld [vmem:[#allocation6 + $0x524] ss:$36 sps:$4 sm:$0xff]   ;;  %v4367_v53 = vld [vmem:[#allocation6 + $0x52c] ss:$36 sps:$4 sm:$0xff]  }
  0xd8   : > { %1792 = vmatpush1.bf16.msra.mxu0 %v4248_v54  ;;  %1874 = vmatpush1.bf16.msra.mxu1 %v4296_v56  ;;  %v4311_v54 = vld [vmem:[#allocation6 + $0x520] ss:$36 sps:$4 sm:$0xff]   ;;  %v4365_v56 = vld [vmem:[#allocation6 + $0x528] ss:$36 sps:$4 sm:$0xff]  }
  0xd9   : > { %1793 = vmatprep.subr.bf16.mxu0 %v4253_v55  ;;  %1875 = vmatprep.subr.bf16.mxu1 %v4304_v57  ;;  %v4319_v55 = vld [vmem:[#allocation6 + $0x56c] ss:$36 sps:$4 sm:$0xff]   ;;  %v4370_v57 = vld [vmem:[#allocation6 + $0x574] ss:$36 sps:$4 sm:$0xff]  }
  0xdc   : > { %1794 = vmatpush1.bf16.msra.mxu0 %v4251_v58  ;;  %1876 = vmatpush1.bf16.msra.mxu1 %v4302_v60  ;;  %v4317_v58 = vld [vmem:[#allocation6 + $0x568] ss:$36 sps:$4 sm:$0xff]   ;;  %v4368_v60 = vld [vmem:[#allocation6 + $0x570] ss:$36 sps:$4 sm:$0xff]  }
  0xdd   : > { %1795 = vmatprep.subr.bf16.mxu0 %v4256_v59  ;;  %1877 = vmatprep.subr.bf16.mxu1 %v4310_v61  ;;  %v4325_v59 = vld [vmem:[#allocation6 + $0x5b4] ss:$36 sps:$4 sm:$0xff]   ;;  %v4373_v61 = vld [vmem:[#allocation6 + $0x5bc] ss:$36 sps:$4 sm:$0xff]  }
  0xe0   : > { %1796 = vmatpush1.bf16.msra.mxu0 %v4254_v62  ;;  %1878 = vmatpush1.bf16.msra.mxu1 %v4308_v0  ;;  %v4323_v62 = vld [vmem:[#allocation6 + $0x5b0] ss:$36 sps:$4 sm:$0xff]   ;;  %v4371_v0 = vld [vmem:[#allocation6 + $0x5b8] ss:$36 sps:$4 sm:$0xff]  }
  0xe1   : > { %1797 = vmatprep.subr.bf16.mxu0 %v4259_v63  ;;  %1879 = vmatprep.subr.bf16.mxu1 %v4316_v1  ;;  %v4331_v63 = vld [vmem:[#allocation6 + $0x5fc] ss:$36 sps:$4 sm:$0xff]   ;;  %v4376_v1 = vld [vmem:[#allocation6 + $0x604] ss:$36 sps:$4 sm:$0xff]  }
  0xe4   : > { %1798 = vmatpush1.bf16.msra.mxu0 %v4257_v2  ;;  %1880 = vmatpush1.bf16.msra.mxu1 %v4314_v4  ;;  %v4329_v2 = vld [vmem:[#allocation6 + $0x5f8] ss:$36 sps:$4 sm:$0xff]   ;;  %v4374_v4 = vld [vmem:[#allocation6 + $0x600] ss:$36 sps:$4 sm:$0xff]  }
  0xe5   : > { %1799 = vmatprep.subr.bf16.mxu0 %v4262_v3  ;;  %1881 = vmatprep.subr.bf16.mxu1 %v4322_v6  ;;  %v4337_v3 = vld [vmem:[#allocation6 + $0x644] ss:$36 sps:$4 sm:$0xff]   ;;  %v4379_v6 = vld [vmem:[#allocation6 + $0x64c] ss:$36 sps:$4 sm:$0xff]  }
  0xe8   : > { %1800 = vmatpush1.bf16.msra.mxu0 %v4260_v7  ;;  %1882 = vmatpush1.bf16.msra.mxu1 %v4320_v9  ;;  %v4335_v7 = vld [vmem:[#allocation6 + $0x640] ss:$36 sps:$4 sm:$0xff]   ;;  %v4377_v9 = vld [vmem:[#allocation6 + $0x648] ss:$36 sps:$4 sm:$0xff]  }
  0xe9   : > { %1801 = vmatprep.subr.bf16.mxu0 %v4265_v8  ;;  %1883 = vmatprep.subr.bf16.mxu1 %v4328_v10  ;;  %v4343_v8 = vld [vmem:[#allocation6 + $0x68c] ss:$36 sps:$4 sm:$0xff]   ;;  %v4382_v10 = vld [vmem:[#allocation6 + $0x694] ss:$36 sps:$4 sm:$0xff]  }
  0xec   : > { %1802 = vmatpush1.bf16.msra.mxu0 %v4263_v11  ;;  %1884 = vmatpush1.bf16.msra.mxu1 %v4326_v13  ;;  %v4341_v11 = vld [vmem:[#allocation6 + $0x688] ss:$36 sps:$4 sm:$0xff]   ;;  %v4384_v13 = vld [vmem:[#allocation6 + $0x260] ss:$36 sps:$4 sm:$0xff]  }
  0xed   : > { %1803 = vmatprep.subr.bf16.mxu0 %v4268_v12  ;;  %1885 = vmatprep.subr.bf16.mxu1 %v4334_v15  ;;  %v4380_v12 = vld [vmem:[#allocation6 + $0x690] ss:$36 sps:$4 sm:$0xff]   ;;  %v4385_v15 = vld [vmem:[#allocation6 + $0x20] ss:$36 sps:$4 sm:$0xff]  }
  0xf0   : > { %1804 = vmatpush1.bf16.msra.mxu0 %v4266_v16  ;;  %1886 = vmatpush1.bf16.msra.mxu1 %v4332_v18  ;;  %v4383_v16 = vld [vmem:[#allocation6 + $0x4a0] ss:$36 sps:$4 sm:$0xff]   ;;  %v4693_v18 = vmov 0.0  }
  0xf1   : > { %1805 = vmatprep.subr.bf16.mxu0 %v4271_v17  ;;  %1887 = vmatprep.subr.bf16.mxu1 %v4340_v19  ;;  %v4387_v17 = vld [vmem:[#allocation6 + $0x2a8] ss:$36 sps:$4 sm:$0xff]  }
  0xf2   : > { %v4388_v19 = vld [vmem:[#allocation6 + $0x68] ss:$36 sps:$4 sm:$0xff]  }
  0xf4   : > { %1806 = vmatpush1.bf16.msra.mxu0 %v4269_v20  ;;  %1888 = vmatpush1.bf16.msra.mxu1 %v4338_v22  ;;  %v4386_v20 = vld [vmem:[#allocation6 + $0x4e8] ss:$36 sps:$4 sm:$0xff]   ;;  %v4391_v22 = vld [vmem:[#allocation6 + $0xb0] ss:$36 sps:$4 sm:$0xff]  }
  0xf5   : > { %1807 = vmatprep.subr.bf16.mxu0 %v4274_v21  ;;  %1889 = vmatprep.subr.bf16.mxu1 %v4346_v23  ;;  %v4390_v21 = vld [vmem:[#allocation6 + $0x2f0] ss:$36 sps:$4 sm:$0xff]  }
  0xf6   : > { %v4389_v23 = vld [vmem:[#allocation6 + $0x530] ss:$36 sps:$4 sm:$0xff]  }
  0xf8   : > { %1808 = vmatpush1.bf16.msra.mxu0 %v4272_v24  ;;  %1890 = vmatpush1.bf16.msra.mxu1 %v4344_v26  ;;  %v4393_v24 = vld [vmem:[#allocation6 + $0x338] ss:$36 sps:$4 sm:$0xff]  }
  0xf9   : > { %1809 = vmatprep.subr.bf16.mxu0 %v4277_v25  ;;  %1891 = vmatprep.subr.bf16.mxu1 %v4349_v27  ;;  %v4394_v25 = vld [vmem:[#allocation6 + $0xf8] ss:$36 sps:$4 sm:$0xff]   ;;  %v4396_v27 = vld [vmem:[#allocation6 + $0x380] ss:$36 sps:$4 sm:$0xff]  }
  0xfa   : > { %v4392_v26 = vld [vmem:[#allocation6 + $0x578] ss:$36 sps:$4 sm:$0xff]  }
  0xfc   : > { %1810 = vmatpush1.bf16.msra.mxu0 %v4275_v28  ;;  %1892 = vmatpush1.bf16.msra.mxu1 %v4347_v30  ;;  %v4395_v28 = vld [vmem:[#allocation6 + $0x5c0] ss:$36 sps:$4 sm:$0xff]   ;;  %v4400_v30 = vld [vmem:[#allocation6 + $0x188] ss:$36 sps:$4 sm:$0xff]  }
  0xfd   : > { %1811 = vmatprep.subr.bf16.mxu0 %v4283_v29  ;;  %1893 = vmatprep.subr.bf16.mxu1 %v4352_v31  ;;  %v4399_v29 = vld [vmem:[#allocation6 + $0x3c8] ss:$36 sps:$4 sm:$0xff]  }
  0xfe   : > { %v4398_v31 = vld [vmem:[#allocation6 + $0x608] ss:$36 sps:$4 sm:$0xff]  }
 0x100   : > { %1812 = vmatpush1.bf16.msra.mxu0 %v4281_v32  ;;  %1894 = vmatpush1.bf16.msra.mxu1 %v4350_v34  ;;  %v4402_v32 = vld [vmem:[#allocation6 + $0x410] ss:$36 sps:$4 sm:$0xff]  }
 0x101   : > { %1813 = vmatprep.subr.bf16.mxu0 %v4289_v33  ;;  %1895 = vmatprep.subr.bf16.mxu1 %v4355_v35  ;;  %v4403_v33 = vld [vmem:[#allocation6 + $0x1d0] ss:$36 sps:$4 sm:$0xff]   ;;  %v4405_v35 = vld [vmem:[#allocation6 + $0x458] ss:$36 sps:$4 sm:$0xff]  }
 0x102   : > { %v4401_v34 = vld [vmem:[#allocation6 + $0x650] ss:$36 sps:$4 sm:$0xff]  }
 0x104   : > { %1814 = vmatpush1.bf16.msra.mxu0 %v4287_v36  ;;  %1896 = vmatpush1.bf16.msra.mxu1 %v4353_v38  ;;  %v4406_v36 = vld [vmem:[#allocation6 + $0x218] ss:$36 sps:$4 sm:$0xff]  }
 0x105   : > { %1815 = vmatprep.subr.bf16.mxu0 %v4295_v37  ;;  %1897 = vmatprep.subr.bf16.mxu1 %v4358_v39  ;;  %v4404_v37 = vld [vmem:[#allocation6 + $0x698] ss:$36 sps:$4 sm:$0xff]  }
 0x108   : > { %1816 = vmatpush1.bf16.msra.mxu0 %v4293_v41  ;;  %1898 = vmatpush1.bf16.msra.mxu1 %v4356_v42 }
 0x109   : > { %1826 = vmatprep.subr.bf16.mxu0 %v4301_v43  ;;  %1908 = vmatprep.subr.bf16.mxu1 %v4361_v44 }
 0x10b   : > { %1818 = vmatmul.mubr.bf16.vlgmr.msra.gmra.mrb[4].mxu0 %v4918_v5  ;;  %1900 = vmatmul.mubr.bf16.vlgmr.msra.gmra.mrb[4].mxu1 %v4918_v5 }
 0x10c   : > { %1827 = vmatpush1.bf16.msra.mxu0 %v4299_v45  ;;  %1858 = vmatprep.mubr.bf16.mxu0 %v4692_v14 }
 0x10d   : > { %1828 = vmatprep.subr.bf16.mxu0 %v4307_v46  ;;  %1909 = vmatpush1.bf16.msra.mxu1 %v4359_v47 }
 0x10e   : > { %1910 = vmatprep.subr.bf16.mxu1 %v4364_v49  ;;  %1940 = vmatprep.mubr.bf16.mxu1 %v4692_v14 }
 0x110   : > { %1829 = vmatpush1.bf16.msra.mxu0 %v4305_v50 }
 0x111   : > { %1830 = vmatprep.subr.bf16.mxu0 %v4313_v51  ;;  %1911 = vmatpush1.bf16.msra.mxu1 %v4362_v52 }
 0x112   : > { %1912 = vmatprep.subr.bf16.mxu1 %v4367_v53 }
 0x114   : > { %1831 = vmatpush1.bf16.msra.mxu0 %v4311_v54 }
 0x115   : > { %1832 = vmatprep.subr.bf16.mxu0 %v4319_v55  ;;  %1913 = vmatpush1.bf16.msra.mxu1 %v4365_v56 }
 0x116   : > { %1914 = vmatprep.subr.bf16.mxu1 %v4370_v57 }
 0x118   : > { %1833 = vmatpush1.bf16.msra.mxu0 %v4317_v58 }
 0x119   : > { %1834 = vmatprep.subr.bf16.mxu0 %v4325_v59  ;;  %1915 = vmatpush1.bf16.msra.mxu1 %v4368_v60 }
 0x11a   : > { %1916 = vmatprep.subr.bf16.mxu1 %v4373_v61 }
 0x11c   : > { %1835 = vmatpush1.bf16.msra.mxu0 %v4323_v62 }
 0x11d   : > { %1836 = vmatprep.subr.bf16.mxu0 %v4331_v63  ;;  %1917 = vmatpush1.bf16.msra.mxu1 %v4371_v0 }
 0x11e   : > { %1918 = vmatprep.subr.bf16.mxu1 %v4376_v1 }
 0x120   : > { %1837 = vmatpush1.bf16.msra.mxu0 %v4329_v2 }
 0x121   : > { %1838 = vmatprep.subr.bf16.mxu0 %v4337_v3  ;;  %1919 = vmatpush1.bf16.msra.mxu1 %v4374_v4 }
 0x122   : > { %1920 = vmatprep.subr.bf16.mxu1 %v4379_v6 }
 0x124   : > { %1839 = vmatpush1.bf16.msra.mxu0 %v4335_v7 }
 0x125   : > { %1840 = vmatprep.subr.bf16.mxu0 %v4343_v8  ;;  %1921 = vmatpush1.bf16.msra.mxu1 %v4377_v9 }
 0x126   : > { %1922 = vmatprep.subr.bf16.mxu1 %v4382_v10 }
 0x128   : > { %1841 = vmatpush1.bf16.msra.mxu0 %v4341_v11 }
 0x129   : > { %1923 = vmatpush1.bf16.msra.mxu1 %v4380_v12  ;;  %3796 = vmatprep.subr.bf16.mxu0 %v4384_v13 }
 0x12a   : > { %3882 = vmatprep.subr.bf16.mxu1 %v4693_v18 }
 0x12b   : > { %1859 = vmatmul.mubr.bf16.vlgmr.msra.gmra.mrb[4].mxu0 %v4925_v40 }
 0x12c   : > { %1941 = vmatmul.mubr.bf16.vlgmr.msra.gmra.mrb[4].mxu1 %v4925_v40  ;;  %3797 = vmatpush3.bf16.msra.mxu0 %v4385_v15 }
 0x12d   : > { %3883 = vmatpush3.bf16.msra.mxu1 %v4383_v16  ;;  %3798 = vmatprep.subr.bf16.mxu0 %v4387_v17  ;;  %v4989_v17 = vld [vmem:[%s5161_s4] sm:$0xff] }
 0x12e   : > { %3884 = vmatprep.subr.bf16.mxu1 %v4693_v18  ;;  %1981 = vmatprep.mubr.bf16.mxu0 %v4913_v48  ;;  %v4397_v48 = vld [vmem:[#allocation6 + $0x140] ss:$36 sps:$4 sm:$0xff]  }
 0x12f   : > { %3898 = vmatprep.mubr.msk.bf16.mxu1 %vm4694_vm0, %v4693_v18 }
 0x130   : > { %3799 = vmatpush3.bf16.msra.mxu0 %v4388_v19 }
 0x131   : > { %3885 = vmatpush3.bf16.msra.mxu1 %v4386_v20  ;;  %3800 = vmatprep.subr.bf16.mxu0 %v4390_v21 }
 0x132   : > { %3886 = vmatprep.subr.bf16.mxu1 %v4693_v18 }
 0x134   : > { %3801 = vmatpush3.bf16.msra.mxu0 %v4391_v22 }
 0x135   : > { %3887 = vmatpush3.bf16.msra.mxu1 %v4389_v23  ;;  %3802 = vmatprep.subr.bf16.mxu0 %v4393_v24 }
 0x136   : > { %3888 = vmatprep.subr.bf16.mxu1 %v4693_v18 }
 0x138   : > { %3803 = vmatpush3.bf16.msra.mxu0 %v4394_v25 }
 0x139   : > { %3889 = vmatpush3.bf16.msra.mxu1 %v4392_v26  ;;  %3804 = vmatprep.subr.bf16.mxu0 %v4396_v27 }
 0x13a   : > { %3890 = vmatprep.subr.bf16.mxu1 %v4693_v18 }
 0x13c   : > { %3805 = vmatpush3.bf16.msra.mxu0 %v4397_v48 }
 0x13d   : > { %3891 = vmatpush3.bf16.msra.mxu1 %v4395_v28  ;;  %3806 = vmatprep.subr.bf16.mxu0 %v4399_v29 }
 0x13e   : > { %3892 = vmatprep.subr.bf16.mxu1 %v4693_v18 }
 0x140   : > { %3807 = vmatpush3.bf16.msra.mxu0 %v4400_v30 }
 0x141   : > { %3893 = vmatpush3.bf16.msra.mxu1 %v4398_v31  ;;  %3808 = vmatprep.subr.bf16.mxu0 %v4402_v32 }
 0x142   : > { %3894 = vmatprep.subr.bf16.mxu1 %v4693_v18 }
 0x144   : > { %3809 = vmatpush3.bf16.msra.mxu0 %v4403_v33 }
 0x145   : > { %3895 = vmatpush3.bf16.msra.mxu1 %v4401_v34  ;;  %3810 = vmatprep.subr.bf16.mxu0 %v4405_v35 }
 0x146   : > { %3896 = vmatprep.subr.bf16.mxu1 %v4693_v18 }
 0x148   : > { %3811 = vmatpush3.bf16.msra.mxu0 %v4406_v36 }
 0x149   : > { %3897 = vmatpush3.bf16.msra.mxu1 %v4404_v37  ;;  %3926 = vmatprep.subr.bf16.mxu0 %v4693_v18 }
 0x14a   : > { %3902 = vmatprep.subr.bf16.mxu1 %v4693_v18 }
 0x14b   : > { %1982 = vmatmul.mubr.bf16.vlgmr.msra.gmra.mrb[8].mxu0 %v4918_v5 }
 0x14c   : > { %3899 = vmatmul.mubr.bf16.vlgmr.msra.gmra.mrb[8].mxu1 %v4925_v40  ;;  %3928 = vmatprep.mubr.msk.bf16.mxu0 %vm4694_vm0, %v4693_v18 }
 0x14d   : > { %3904 = vmatprep.mubr.msk.bf16.mxu1 %vm4694_vm0, %v4693_v18 }
 0x19e   : > { %v1696_v38 = vpop.f32.mrb[0].mxu0  ;;  %v1778_v39 = vpop.f32.mrb[0].mxu1 }
 0x19f   : > { %v2030_v41 = vpack.c.bf16 %v1696_v38, %v1696_v38  ;;  %v1698_v42 = vpop.f32.mrb[1].mxu0  ;;  %v1780_v43 = vpop.f32.mrb[1].mxu1  ;;  %v2486_v63 = vpack.c.bf16 %v1778_v39, %v1778_v39 }
 0x1a0   : > { %v4956_v44 = vpack.c.bf16 %v1780_v43, %v1780_v43  ;;  %v1700_v45 = vpop.f32.mrb[2].mxu0  ;;  %v1782_v46 = vpop.f32.mrb[2].mxu1  ;;  %v2260_v61 = vpack.c.bf16 %v1698_v42, %v1698_v42 }
 0x1a1   : > { %v1783_v47 = vpop.f32.mrb[3].mxu1  ;;  %2142 = vrot.lane.b32.xlu1 %v2030_v41, %s4695_s24  ;;  %v1701_v5 = vpop.f32.mrb[3].mxu0 }
 0x1a2   : > { %v2038_v40 = vsel %vm2033_vm1, %v4956_v44, 0 }
 0x1a3   : > { %3903 = vmatpush3.bf16.xpose.msra.mxu1 %v2038_v40 }
 0x1a4   : > { %3908 = vmatprep.subr.bf16.mxu1 %v4693_v18 }
 0x1aa   : > { %3905 = vmatmul.mubr.msk.bf16.vlgmr.msra.gmra.mrb[12].mxu1 %vm2033_vm1, %v2030_v41 }
 0x1ab   : > { %3910 = vmatprep.mubr.msk.bf16.mxu1 %vm4694_vm0, %v4693_v18 }
 0x1fe   : > { %v1860_v49 = vpop.f32.mrb[4].mxu0 }
 0x1ff   : > { %v2261_v50 = vpack.c.bf16 %v1860_v49, %v1860_v49  ;;  %v1862_v51 = vpop.f32.mrb[5].mxu0  ;;  %v1942_v52 = vpop.f32.mrb[4].mxu1 }
 0x200   : > { %v4965_v53 = vpack.c.bf16 %v1942_v52, %v1942_v52  ;;  %v4967_v54 = vpop.f32.mrb[5].mxu1  ;;  %v1864_v55 = vpop.f32.mrb[6].mxu0  ;;  %v2487_v62 = vpack.c.bf16 %v1862_v51, %v1862_v51 }
 0x201   : > { %v2267_v56 = vsel %vm2033_vm1, %v2261_v50, 0  ;;  %2372 = vrot.lane.b32.xlu1 %v2261_v50, %s4695_s24  ;;  %v1946_v57 = vpop.f32.mrb[6].mxu1  ;;  %v1865_v58 = vpop.f32.mrb[7].mxu0 }
 0x202   : > { %3927 = vmatpush3.bf16.xpose.msra.mxu0 %v2267_v56  ;;  %v2096_v59 = vsel %vm2094_vm2, %v4965_v53, 0  ;;  %v1947_v60 = vpop.f32.mrb[7].mxu1  ;;  %v2493_v15 = vsel %vm2033_vm1, %v2487_v62, 0 }
 0x203   : > { %3909 = vmatpush3.bf16.msra.mxu1 %v2096_v59  ;;  %3938 = vmatprep.subr.bf16.mxu0 %v4693_v18 }
 0x204   : > { %3914 = vmatprep.subr.bf16.mxu1 %v4693_v18 }
 0x205   : > { %2369 = vrot.lane.b32.xlu1 %v2260_v61, %s4695_s24 }
 0x209   : > { %3929 = vmatmul.mubr.msk.bf16.vlgmr.msra.gmra.mrb[12].mxu0 %vm2033_vm1, %v2260_v61  ;;  %2598 = vrot.lane.b32.xlu1 %v2487_v62, %s4695_s24 }
 0x20a   : > { %3940 = vmatprep.mubr.msk.bf16.mxu0 %vm4694_vm0, %v4693_v18 }
 0x20d   : > { %2595 = vrot.lane.b32.xlu1 %v2486_v63, %s4695_s24 }
 0x213   : > { %v2143_v11 = vpop.permute.xlu1 %2142 }
 0x21e   : > { %v3812_v0 = vpop.f32.mrb[8].mxu0 }
 0x21f   : > { %v2023_v1 = vpop.f32.mrb[8].mxu1  ;;  %v3813_v2 = vpop.f32.mrb[9].mxu0 }
 0x220   : > { %v3814_v3 = vadd.f32 %v3813_v2, %v3812_v0  ;;  %v3900_v4 = vpop.f32.mrb[9].mxu1  ;;  %v3815_v6 = vpop.f32.mrb[10].mxu0 }
 0x221   : > { %v2026_v7 = vpop.f32.mrb[10].mxu1  ;;  %v3816_v8 = vpop.f32.mrb[11].mxu0 }
 0x222   : > { %v4981_v9 = vadd.f32 %v3814_v3, %v2023_v1  ;;  %v3901_v10 = vpop.f32.mrb[11].mxu1 }
 0x223   : > { %v2262_v10 = vpack.c.bf16 %v4967_v54, %v4967_v54 }
 0x273   : > { %v2373_v12 = vpop.permute.xlu1 %2372 }
 0x274   : > { %v2378_v13 = vsel %vm2033_vm1, %v2373_v12, 0 }
 0x275   : > { %3939 = vmatpush3.bf16.xpose.msra.mxu0 %v2378_v13 }
 0x276   : > { %3950 = vmatprep.subr.bf16.mxu0 %v4693_v18 }
 0x277   : > { %v2370_v16 = vpop.permute.xlu1 %2369 }
 0x27b   : > { %v2599_v25 = vpop.permute.xlu1 %2598 }
 0x27c   : > { %3941 = vmatmul.mubr.msk.bf16.vlgmr.msra.gmra.mrb[16].mxu0 %vm2033_vm1, %v2370_v16  ;;  %v2604_v26 = vsel %vm2033_vm1, %v2599_v25, 0 }
 0x27d   : > { %v2074_v19 = vpop.f32.mrb[12].mxu1  ;;  %3951 = vmatpush3.bf16.xpose.msra.mxu0 %v2493_v15  ;;  %3952 = vmatprep.mubr.msk.bf16.mxu0 %vm4694_vm0, %v4693_v18 }
 0x27e   : > { %v2075_v20 = vadd.f32 %v2074_v19, %v4989_v17  ;;  %v3906_v21 = vpop.f32.mrb[13].mxu1  ;;  %3962 = vmatprep.subr.bf16.mxu0 %v4693_v18 }
 0x27f   : > { %v2077_v22 = vpop.f32.mrb[14].mxu1  ;;  %v2596_v27 = vpop.permute.xlu1 %2595 }
 0x280   : > { %v3907_v23 = vpop.f32.mrb[15].mxu1  ;;  %v2081_v24 = vsel %vm2080_vm3, %v2075_v20, -inf }
 0x281   : > { %2082 = vmax.xlane.f32.xlu0 %v2081_v24 }
 0x284   : > { %3953 = vmatmul.mubr.msk.bf16.vlgmr.msra.gmra.mrb[20].mxu0 %vm2033_vm1, %v2486_v63 }
 0x285   : > { %3963 = vmatpush3.bf16.xpose.msra.mxu0 %v2604_v26  ;;  %3964 = vmatprep.mubr.msk.bf16.mxu0 %vm4694_vm0, %v4693_v18 }
 0x28c   : > { %3965 = vmatmul.mubr.msk.bf16.vlgmr.msra.gmra.mrb[24].mxu0 %vm2033_vm1, %v2596_v27 }
 0x297   : > { %2145 = vrot.lane.b32.xlu0 %v4956_v44, %s4695_s24 }
 0x2dc   : > { %v2303_v48 = vpop.f32.mrb[12].mxu0 }
 0x2dd   : > { %v5005_v28 = vadd.f32 %v2303_v48, %v4989_v17  ;;  %v3930_v29 = vpop.f32.mrb[13].mxu0  ;;  %v2323_v48 = vsel %vm2094_vm2, %v2262_v10, 0 }
 0x2de   : > { %v2306_v30 = vpop.f32.mrb[14].mxu0 }
 0x2df   : > { %v3931_v31 = vpop.f32.mrb[15].mxu0  ;;  %v2309_v32 = vsel %vm2080_vm3, %v5005_v28, -inf }
 0x2e0   : > { %2310 = vmax.xlane.f32.xlu0 %v2309_v32 }
 0x2f6   : > { %2204 = vrot.lane.b32.xlu0 %v4965_v53, %s4695_s24 }
 0x30e   : > { %v2083_v33 = vpop.xlane.xlu0 %2082 }
 0x30f   : > { %v2084_v34 = vsub.f32 %v2075_v20, %v2083_v33 }
 0x311   : > { %v2085_v35 = vmul.f32 1.442695, %v2084_v34 }
 0x312   : > { %v2146_v37 = vpop.permute.xlu0 %2145 }
 0x313   : > { %4503 = vpow2.f32 %v2085_v35  ;;  %v2151_v39 = vsel %vm2033_vm1, %v2146_v37, 0 }
 0x31d   : > { %v5011_v36 = vpop.eup %4503 }
 0x31e   : > { %v2090_v38 = vpack.c.bf16 %v5011_v36, %v5011_v36  ;;  %v2087_v37 = vsel %vm2080_vm3, %v5011_v36, 0.0 }
 0x320   : > { %3911 = vmatmul.mubr.msk.bf16.vlgmr.msra.gmra.mrb[16].mxu1 %vm2080_vm3, %v2090_v38 }
 0x321   : > { %3915 = vmatpush3.bf16.xpose.msra.mxu1 %v2151_v39  ;;  %3916 = vmatprep.mubr.msk.bf16.mxu1 %vm4694_vm0, %v4693_v18 }
 0x322   : > { %3920 = vmatprep.subr.bf16.mxu1 %v4693_v18 }
 0x328   : > { %3917 = vmatmul.mubr.msk.bf16.vlgmr.msra.gmra.mrb[20].mxu1 %vm2033_vm1, %v2143_v11  ;;  %v2488_v11 = vpack.c.bf16 %v4981_v9, %v4981_v9 }
 0x329   : > { %3922 = vmatprep.mubr.msk.bf16.mxu1 %vm4694_vm0, %v4693_v18 }
 0x34f   : > { %v2414_v41 = vpop.f32.mrb[16].mxu0 }
 0x350   : > { %v3942_v42 = vpop.f32.mrb[17].mxu0  ;;  %v2415_v2 = vadd.f32 %v2414_v41, %v4989_v17 }
 0x351   : > { %v2417_v43 = vpop.f32.mrb[18].mxu0  ;;  %v2549_v42 = vsel %vm2094_vm2, %v2488_v11, 0 }
 0x352   : > { %v3943_v44 = vpop.f32.mrb[19].mxu0  ;;  %v2420_v7 = vsel %vm2080_vm3, %v2415_v2, -inf }
 0x357   : > { %v2529_v45 = vpop.f32.mrb[20].mxu0 }
 0x358   : > { %v3954_v46 = vpop.f32.mrb[21].mxu0  ;;  %v2530_v6 = vadd.f32 %v2529_v45, %v4989_v17 }
 0x359   : > { %v2532_v47 = vpop.f32.mrb[22].mxu0 }
 0x35a   : > { %v3955_v5 = vpop.f32.mrb[23].mxu0  ;;  %v2535_v8 = vsel %vm2080_vm3, %v2530_v6, -inf  ;;  %v4407_v47 = vld [vmem:[#allocation8] ss:$12 sps:$4 sm:$0xff]  }
 0x35b   : > { %v4409_v5 = vld [vmem:[#allocation8 + $0x4] ss:$12 sps:$4 sm:$0xff]  }
 0x35c   : > { %3215 = vmatprep.subr.bf16.mxu0 %v4409_v5 }
 0x35d   : > { %3216 = vmatpush1.bf16.msra.mxu0 %v4407_v47 }
 0x35f   : > { %v2640_v40 = vpop.f32.mrb[24].mxu0 }
 0x360   : > { %v2641_v49 = vadd.f32 %v2640_v40, %v4989_v17  ;;  %v3966_v50 = vpop.f32.mrb[25].mxu0  ;;  %v4412_v40 = vld [vmem:[#allocation8 + $0x1c] ss:$12 sps:$4 sm:$0xff]  }
 0x361   : > { %v2643_v51 = vpop.f32.mrb[26].mxu0  ;;  %3217 = vmatprep.subr.bf16.mxu0 %v4412_v40  ;;  %v4415_v50 = vld [vmem:[#allocation8 + $0x34] ss:$12 sps:$4 sm:$0xff]  }
 0x362   : > { %v3967_v52 = vpop.f32.mrb[27].mxu0  ;;  %v2646_v53 = vsel %vm2080_vm3, %v2641_v49, -inf  ;;  %v4434_v51 = vld [vmem:[#allocation8 + $0xc8] ss:$12 sps:$4 sm:$0xff]  }
 0x363   : > { %2647 = vmax.xlane.f32.xlu0 %v2646_v53  ;;  %v4435_v52 = vld [vmem:[#allocation8 + $0x8] ss:$12 sps:$4 sm:$0xff]   ;;  %v4413_v53 = vld [vmem:[#allocation8 + $0x30] ss:$12 sps:$4 sm:$0xff]  }
 0x364   : > { %v4466_v40 = vld [vmem:[#allocation8 + $0x168] ss:$12 sps:$4 sm:$0xff]  }
 0x36d   : > { %v2311_v55 = vpop.xlane.xlu0 %2310 }
 0x371   : > { %v2205_v56 = vpop.permute.xlu0 %2204 }
 0x372   : > { %v2210_v57 = vsel %vm2094_vm2, %v2205_v56, 0  ;;  %v4416_v56 = vld [vmem:[#allocation8 + $0x48] ss:$12 sps:$4 sm:$0xff]  }
 0x373   : > { %3921 = vmatpush3.bf16.msra.mxu1 %v2210_v57  ;;  %v4421_v57 = vld [vmem:[#allocation8 + $0x64] ss:$12 sps:$4 sm:$0xff]  }
 0x374   : > { %3932 = vmatprep.subr.bf16.mxu1 %v4693_v18 }
 0x3f0   : > { %v2648_v12 = vpop.xlane.xlu0 %2647 }
 0x3f1   : > { %v2649_v13 = vsub.f32 %v2641_v49, %v2648_v12  ;;  %v4410_v49 = vld [vmem:[#allocation8 + $0x18] ss:$12 sps:$4 sm:$0xff]  }
 0x3f2   : > { %3218 = vmatpush1.bf16.msra.mxu0 %v4410_v49 }
 0x3f3   : > { %v5027_v58 = vpop.f32.mrb[16].mxu1  ;;  %v2650_v19 = vmul.f32 1.442695, %v2649_v13  ;;  %3219 = vmatprep.subr.bf16.mxu0 %v4415_v50  ;;  %v4439_v13 = vld [vmem:[#allocation8 + $0xe0] ss:$12 sps:$4 sm:$0xff]  }
 0x3f4   : > { %v3912_v59 = vpop.f32.mrb[17].mxu1 }
 0x3f5   : > { %v2135_v60 = vpop.f32.mrb[18].mxu1  ;;  %v4419_v59 = vld [vmem:[#allocation8 + $0x60] ss:$12 sps:$4 sm:$0xff]  }
 0x3f6   : > { %v3913_v61 = vpop.f32.mrb[19].mxu1  ;;  %3220 = vmatpush1.bf16.msra.mxu0 %v4413_v53  ;;  %v4424_v60 = vld [vmem:[#allocation8 + $0x7c] ss:$12 sps:$4 sm:$0xff]  }
 0x3f7   : > { %v4422_v61 = vld [vmem:[#allocation8 + $0x78] ss:$12 sps:$4 sm:$0xff]  }
 0x3fb   : > { %v2187_v62 = vpop.f32.mrb[20].mxu1 }
 0x3fc   : > { %v2188_v63 = vadd.f32 %v2187_v62, %v4989_v17  ;;  %v3918_v0 = vpop.f32.mrb[21].mxu1  ;;  %v2312_v17 = vsub.f32 %v5005_v28, %v2311_v55  ;;  %v4418_v55 = vld [vmem:[#allocation8 + $0x4c] ss:$12 sps:$4 sm:$0xff]   ;;  %v4427_v62 = vld [vmem:[#allocation8 + $0x94] ss:$12 sps:$4 sm:$0xff]  }
 0x3fd   : > { %v2190_v1 = vpop.f32.mrb[22].mxu1  ;;  %3221 = vmatprep.subr.bf16.mxu0 %v4418_v55  ;;  %v4425_v0 = vld [vmem:[#allocation8 + $0x90] ss:$12 sps:$4 sm:$0xff]  }
 0x3fe   : > { %v3919_v3 = vpop.f32.mrb[23].mxu1  ;;  %v2193_v4 = vsel %vm2080_vm3, %v2188_v63, -inf  ;;  %v2313_v23 = vmul.f32 1.442695, %v2312_v17  ;;  %3222 = vmatpush1.bf16.msra.mxu0 %v4416_v56  ;;  %v4430_v1 = vld [vmem:[#allocation8 + $0xac] ss:$12 sps:$4 sm:$0xff]  }
 0x3ff   : > { %2194 = vmax.xlane.f32.xlu1 %v2193_v4  ;;  %3223 = vmatprep.subr.bf16.mxu0 %v4421_v57  ;;  %v4428_v3 = vld [vmem:[#allocation8 + $0xa8] ss:$12 sps:$4 sm:$0xff]   ;;  %v4433_v4 = vld [vmem:[#allocation8 + $0xc4] ss:$12 sps:$4 sm:$0xff]  }
 0x400   : > { %v4441_v17 = vld [vmem:[#allocation8 + $0xf0] ss:$12 sps:$4 sm:$0xff]  }
 0x402   : > { %3224 = vmatpush1.bf16.msra.mxu0 %v4419_v59 }
 0x403   : > { %2421 = vmax.xlane.f32.xlu1 %v2420_v7  ;;  %3225 = vmatprep.subr.bf16.mxu0 %v4424_v60  ;;  %v4438_v7 = vld [vmem:[#allocation8 + $0xdc] ss:$12 sps:$4 sm:$0xff]   ;;  %v4473_v60 = vld [vmem:[#allocation8 + $0x184] ss:$12 sps:$4 sm:$0xff]  }
 0x406   : > { %3226 = vmatpush1.bf16.msra.mxu0 %v4422_v61 }
 0x407   : > { %2536 = vmax.xlane.f32.xlu1 %v2535_v8  ;;  %3227 = vmatprep.subr.bf16.mxu0 %v4427_v62  ;;  %v4436_v8 = vld [vmem:[#allocation8 + $0xd8] ss:$12 sps:$4 sm:$0xff]  }
 0x40a   : > { %3228 = vmatpush1.bf16.msra.mxu0 %v4425_v0 }
 0x40b   : > { %3229 = vmatprep.subr.bf16.mxu0 %v4430_v1 }
 0x40e   : > { %3230 = vmatpush1.bf16.msra.mxu0 %v4428_v3 }
 0x40f   : > { %3231 = vmatprep.subr.bf16.mxu0 %v4433_v4 }
 0x418   : > { %2431 = vrot.lane.b32.xlu1 %v2262_v10, %s4695_s24 }
 0x41c   : > { %2657 = vrot.lane.b32.xlu1 %v2488_v11, %s4695_s24 }
 0x48c   : > { %v2195_v15 = vpop.xlane.xlu1 %2194 }
 0x48d   : > { %v2196_v16 = vsub.f32 %v2188_v63, %v2195_v15 }
 0x48f   : > { %v2197_v20 = vmul.f32 1.442695, %v2196_v16  ;;  %v4440_v16 = vld [vmem:[#allocation8 + $0x20] ss:$12 sps:$4 sm:$0xff]  }
 0x490   : > { %v2422_v21 = vpop.xlane.xlu1 %2421 }
 0x491   : > { %4505 = vpow2.f32 %v2197_v20  ;;  %v2423_v22 = vsub.f32 %v2415_v2, %v2422_v21  ;;  %v4444_v20 = vld [vmem:[#allocation8 + $0xf8] ss:$12 sps:$4 sm:$0xff]  }
 0x492   : > { %4507 = vpow2.f32 %v2650_v19  ;;  %v4443_v19 = vld [vmem:[#allocation8 + $0xf4] ss:$12 sps:$4 sm:$0xff]   ;;  %v4445_v21 = vld [vmem:[#allocation8 + $0x38] ss:$12 sps:$4 sm:$0xff]  }
 0x493   : > { %v2424_v54 = vmul.f32 1.442695, %v2423_v22  ;;  %v4448_v22 = vld [vmem:[#allocation8 + $0x10c] ss:$12 sps:$4 sm:$0xff]  }
 0x494   : > { %v2537_v9 = vpop.xlane.xlu1 %2536 }
 0x495   : > { %4509 = vpow2.f32 %v2424_v54  ;;  %v2538_v29 = vsub.f32 %v2530_v6, %v2537_v9  ;;  %v4431_v6 = vld [vmem:[#allocation8 + $0xc0] ss:$12 sps:$4 sm:$0xff]   ;;  %v4453_v54 = vld [vmem:[#allocation8 + $0x124] ss:$12 sps:$4 sm:$0xff]  }
 0x496   : > { %4511 = vpow2.f32 %v2313_v23  ;;  %3232 = vmatpush1.bf16.msra.mxu0 %v4431_v6  ;;  %v4449_v23 = vld [vmem:[#allocation8 + $0x110] ss:$12 sps:$4 sm:$0xff]  }
 0x497   : > { %v2539_v33 = vmul.f32 1.442695, %v2538_v29  ;;  %3233 = vmatprep.subr.bf16.mxu0 %v4438_v7  ;;  %v4450_v9 = vld [vmem:[#allocation8 + $0x50] ss:$12 sps:$4 sm:$0xff]  }
 0x498   : > { %v2432_v34 = vpop.permute.xlu1 %2431 }
 0x499   : > { %v2437_v39 = vsel %vm2094_vm2, %v2432_v34, 0  ;;  %4513 = vpow2.f32 %v2539_v33 }
 0x49a   : > { %3234 = vmatpush1.bf16.msra.mxu0 %v4436_v8 }
 0x49b   : > { %v4506_v24 = vpop.eup %4505  ;;  %3235 = vmatprep.subr.bf16.mxu0 %v4443_v19 }
 0x49c   : > { %v2199_v25 = vsel %vm2080_vm3, %v4506_v24, 0.0  ;;  %v2202_v26 = vpack.c.bf16 %v4506_v24, %v4506_v24  ;;  %v4508_v27 = vpop.eup %4507  ;;  %v2658_v43 = vpop.permute.xlu1 %2657 }
 0x49d   : > { %2200 = vadd.xlane.f32.xlu0 %v2199_v25  ;;  %v2652_v30 = vsel %vm2080_vm3, %v4508_v27, 0.0  ;;  %v2663_v45 = vsel %vm2094_vm2, %v2658_v43, 0  ;;  %v2655_v46 = vpack.c.bf16 %v4508_v27, %v4508_v27  ;;  %v4454_v25 = vld [vmem:[#allocation8 + $0x128] ss:$12 sps:$4 sm:$0xff]   ;;  %v4468_v43 = vld [vmem:[#allocation8 + $0x16c] ss:$12 sps:$4 sm:$0xff]  }
 0x49e   : > { %3923 = vmatmul.mubr.msk.bf16.vlgmr.msra.gmra.mrb[24].mxu1 %vm2080_vm3, %v2202_v26  ;;  %3236 = vmatpush1.bf16.msra.mxu0 %v4441_v17  ;;  %v4451_v26 = vld [vmem:[#allocation8 + $0x120] ss:$12 sps:$4 sm:$0xff]   ;;  %v4458_v27 = vld [vmem:[#allocation8 + $0x13c] ss:$12 sps:$4 sm:$0xff]  }
 0x49f   : > { %v4510_v28 = vpop.eup %4509  ;;  %3933 = vmatpush3.bf16.msra.mxu1 %v2323_v48  ;;  %3934 = vmatprep.mubr.msk.bf16.mxu1 %vm4694_vm0, %v4693_v18  ;;  %v4455_v48 = vld [vmem:[#allocation8 + $0x68] ss:$12 sps:$4 sm:$0xff]  }
 0x4a0   : > { %v2426_v31 = vsel %vm2080_vm3, %v4510_v28, 0.0  ;;  %3944 = vmatprep.subr.bf16.mxu1 %v4693_v18  ;;  %v4512_v32 = vpop.eup %4511  ;;  %v2429_v41 = vpack.c.bf16 %v4510_v28, %v4510_v28  ;;  %3237 = vmatprep.subr.bf16.mxu0 %v4448_v22  ;;  %v4474_v17 = vld [vmem:[#allocation8 + $0x188] ss:$12 sps:$4 sm:$0xff]  }
 0x4a1   : > { %2653 = vadd.xlane.f32.xlu0 %v2652_v30  ;;  %2427 = vadd.xlane.f32.xlu1 %v2426_v31  ;;  %v2315_v35 = vsel %vm2080_vm3, %v4512_v32, 0.0  ;;  %v2318_v38 = vpack.c.bf16 %v4512_v32, %v4512_v32  ;;  %v4456_v32 = vld [vmem:[#allocation8 + $0x138] ss:$12 sps:$4 sm:$0xff]   ;;  %v4481_v22 = vld [vmem:[#allocation8 + $0x1b4] ss:$12 sps:$4 sm:$0xff]  }
 0x4a3   : > { %v5063_v36 = vpop.eup %4513 }
 0x4a4   : > { %v2544_v44 = vpack.c.bf16 %v5063_v36, %v5063_v36  ;;  %v2541_v8 = vsel %vm2080_vm3, %v5063_v36, 0.0  ;;  %v4475_v36 = vld [vmem:[#allocation8 + $0x198] ss:$12 sps:$4 sm:$0xff]  }
 0x4a5   : > { %2316 = vadd.xlane.f32.xlu0 %v2315_v35  ;;  %2088 = vadd.xlane.f32.xlu1 %v2087_v37  ;;  %v4459_v35 = vld [vmem:[#allocation8 + $0x140] ss:$12 sps:$4 sm:$0xff]  }
 0x4a6   : > { %3935 = vmatmul.mubr.msk.bf16.vlgmr.msra.gmra.mrb[28].mxu1 %vm2080_vm3, %v2318_v38  ;;  %v4460_v37 = vld [vmem:[#allocation8 + $0x80] ss:$12 sps:$4 sm:$0xff]   ;;  %v4461_v38 = vld [vmem:[#allocation8 + $0x150] ss:$12 sps:$4 sm:$0xff]  }
 0x4a7   : > { %3945 = vmatpush3.bf16.msra.mxu1 %v2437_v39  ;;  %3946 = vmatprep.mubr.msk.bf16.mxu1 %vm4694_vm0, %v4693_v18  ;;  %v4463_v39 = vld [vmem:[#allocation8 + $0x154] ss:$12 sps:$4 sm:$0xff]  }
 0x4a8   : > { %3956 = vmatprep.subr.bf16.mxu1 %v4693_v18 }
 0x4ae   : > { %3947 = vmatmul.mubr.msk.bf16.vlgmr.msra.gmra.mrb[32].mxu1 %vm2080_vm3, %v2429_v41  ;;  %v4464_v41 = vld [vmem:[#allocation8 + $0x158] ss:$12 sps:$4 sm:$0xff]  }
 0x4af   : > { %3957 = vmatpush3.bf16.msra.mxu1 %v2549_v42  ;;  %3958 = vmatprep.mubr.msk.bf16.mxu1 %vm4694_vm0, %v4693_v18  ;;  %v4465_v42 = vld [vmem:[#allocation8 + $0x98] ss:$12 sps:$4 sm:$0xff]  }
 0x4b0   : > { %3968 = vmatprep.subr.bf16.mxu1 %v4693_v18 }
 0x4b6   : > { %3959 = vmatmul.mubr.msk.bf16.vlgmr.msra.gmra.mrb[36].mxu1 %vm2080_vm3, %v2544_v44 }
 0x4b7   : > { %3969 = vmatpush3.bf16.msra.mxu1 %v2663_v45  ;;  %3970 = vmatprep.mubr.msk.bf16.mxu1 %vm4694_vm0, %v4693_v18 }
 0x4b8   : > { %3851 = vmatprep.subr.bf16.mxu1 %v4434_v51  ;;  %v4470_v51 = vld [vmem:[#allocation8 + $0xb0] ss:$12 sps:$4 sm:$0xff]  }
 0x4be   : > { %3971 = vmatmul.mubr.msk.bf16.vlgmr.msra.gmra.mrb[40].mxu1 %vm2080_vm3, %v2655_v46  ;;  %v4469_v46 = vld [vmem:[#allocation8 + $0x170] ss:$12 sps:$4 sm:$0xff]  }
 0x4bf   : > { %3852 = vmatpush3.bf16.msra.mxu1 %v4435_v52 }
 0x4c0   : > { %3853 = vmatprep.subr.bf16.mxu1 %v4439_v13 }
 0x4c3   : > { %3854 = vmatpush3.bf16.msra.mxu1 %v4440_v16  ;;  %v4471_v16 = vld [vmem:[#allocation8 + $0x180] ss:$12 sps:$4 sm:$0xff]  }
 0x4c4   : > { %3855 = vmatprep.subr.bf16.mxu1 %v4444_v20  ;;  %v4477_v20 = vld [vmem:[#allocation8 + $0x19c] ss:$12 sps:$4 sm:$0xff]  }
 0x4c7   : > { %3856 = vmatpush3.bf16.msra.mxu1 %v4445_v21  ;;  %v4478_v21 = vld [vmem:[#allocation8 + $0x1a0] ss:$12 sps:$4 sm:$0xff]  }
 0x4c8   : > { %3857 = vmatprep.subr.bf16.mxu1 %v4449_v23  ;;  %v4479_v23 = vld [vmem:[#allocation8 + $0x1b0] ss:$12 sps:$4 sm:$0xff]  }
 0x4cb   : > { %3858 = vmatpush3.bf16.msra.mxu1 %v4450_v9  ;;  %v4486_v9 = vld [vmem:[#allocation8 + $0x1d0] ss:$12 sps:$4 sm:$0xff]  }
 0x4cc   : > { %3859 = vmatprep.subr.bf16.mxu1 %v4454_v25  ;;  %v4489_v25 = vld [vmem:[#allocation8 + $0x1e4] ss:$12 sps:$4 sm:$0xff]  }
 0x4cf   : > { %3860 = vmatpush3.bf16.msra.mxu1 %v4455_v48  ;;  %v4491_v48 = vld [vmem:[#allocation8 + $0x1f8] ss:$12 sps:$4 sm:$0xff]  }
 0x4d0   : > { %3861 = vmatprep.subr.bf16.mxu1 %v4459_v35 }
 0x4d3   : > { %3862 = vmatpush3.bf16.msra.mxu1 %v4460_v37 }
 0x4d4   : > { %3863 = vmatprep.subr.bf16.mxu1 %v4464_v41 }
 0x4d7   : > { %3864 = vmatpush3.bf16.msra.mxu1 %v4465_v42 }
 0x4d8   : > { %3865 = vmatprep.subr.bf16.mxu1 %v4469_v46 }
 0x4db   : > { %3866 = vmatpush3.bf16.msra.mxu1 %v4470_v51 }
 0x4dc   : > { %3974 = vmatprep.subr.bf16.mxu1 %v4693_v18 }
 0x52a   : > { %v2201_v12 = vpop.xlane.xlu0 %2200 }
 0x52e   : > { %v5072_v63 = vpop.xlane.xlu1 %2427  ;;  %v5076_v15 = vpop.xlane.xlu0 %2653 }
 0x532   : > { %v2089_v2 = vpop.xlane.xlu1 %2088  ;;  %v2317_v24 = vpop.xlane.xlu0 %2316 }
 0x533   : > { %4515 = vrcp.f32 %v2089_v2 }
 0x534   : > { %4517 = vrcp.f32 %v2201_v12 }
 0x535   : > { %4519 = vrcp.f32 %v2317_v24  ;;  %v4483_v24 = vld [vmem:[#allocation8 + $0x1c8] ss:$12 sps:$4 sm:$0xff]  }
 0x536   : > { %4521 = vrcp.f32 %v5072_v63 }
 0x537   : > { %4523 = vrcp.f32 %v5076_v15 }
 0x53d   : > { %v4516_v10 = vpop.eup %4515 }
 0x53e   : > { %v2139_v11 = vmul.f32 %v4516_v10, %v5027_v58  ;;  %v4446_v58 = vld [vmem:[#allocation8 + $0x108] ss:$12 sps:$4 sm:$0xff]   ;;  %v4518_v28 = vpop.eup %4517 }
 0x53f   : > { %3238 = vmatpush1.bf16.msra.mxu0 %v4446_v58  ;;  %v4520_v44 = vpop.eup %4519  ;;  %v4482_v58 = vld [vmem:[#allocation8 + $0x1b8] ss:$12 sps:$4 sm:$0xff]  }
 0x540   : > { %2140 = vst.msk [vmem:[#allocation2] sm:$0xff] %vm2033_vm1, %v2139_v11  ;;  %3239 = vmatprep.subr.bf16.mxu0 %v4453_v54  ;;  %v4522_v52 = vpop.eup %4521  ;;  %v4485_v54 = vld [vmem:[#allocation8 + $0x1cc] ss:$12 sps:$4 sm:$0xff]  }
 0x541   : > { %v4524_v1 = vpop.eup %4523 }
 0x543   : > { %3240 = vmatpush1.bf16.msra.mxu0 %v4451_v26  ;;  %v4490_v26 = vld [vmem:[#allocation8 + $0x1e8] ss:$12 sps:$4 sm:$0xff]  }
 0x544   : > { %3241 = vmatprep.subr.bf16.mxu0 %v4458_v27  ;;  %v4493_v27 = vld [vmem:[#allocation8 + $0x1fc] ss:$12 sps:$4 sm:$0xff]  }
 0x547   : > { %3242 = vmatpush1.bf16.msra.mxu0 %v4456_v32  ;;  %v4501_v32 = vld [vmem:[#allocation8 + $0x22c] ss:$12 sps:$4 sm:$0xff]  }
 0x548   : > { %3243 = vmatprep.subr.bf16.mxu0 %v4463_v39 }
 0x54b   : > { %3244 = vmatpush1.bf16.msra.mxu0 %v4461_v38 }
 0x54c   : > { %3245 = vmatprep.subr.bf16.mxu0 %v4468_v43 }
 0x54f   : > { %3246 = vmatpush1.bf16.msra.mxu0 %v4466_v40 }
 0x550   : > { %3256 = vmatprep.subr.bf16.mxu0 %v4473_v60 }
 0x571   : > { %v2246_v29 = vpop.f32.mrb[24].mxu1 }
 0x572   : > { %v2253_v30 = vmul.f32 %v4518_v28, %v2246_v29  ;;  %v3924_v31 = vpop.f32.mrb[25].mxu1  ;;  %v4494_v28 = vld [vmem:[#allocation8 + $0x200] ss:$12 sps:$4 sm:$0xff]  }
 0x573   : > { %v2249_v33 = vpop.f32.mrb[26].mxu1  ;;  %v4497_v29 = vld [vmem:[#allocation8 + $0x214] ss:$12 sps:$4 sm:$0xff]   ;;  %v4498_v31 = vld [vmem:[#allocation8 + $0x218] ss:$12 sps:$4 sm:$0xff]  }
 0x574   : > { %v3925_v34 = vpop.f32.mrb[27].mxu1  ;;  %2255 = vrot.lane.b32.xlu1 %v2253_v30, %s4695_s24  ;;  %v4495_v30 = vld [vmem:[#allocation8 + $0x210] ss:$12 sps:$4 sm:$0xff]   ;;  %v4499_v33 = vld [vmem:[#allocation8 + $0x228] ss:$12 sps:$4 sm:$0xff]  }
 0x575   : > { %v4502_v34 = vld [vmem:[#allocation8 + $0x230] ss:$12 sps:$4 sm:$0xff]  }
 0x579   : > { %v2359_v45 = vpop.f32.mrb[28].mxu1 }
 0x57a   : > { %v2366_v47 = vmul.f32 %v4520_v44, %v2359_v45  ;;  %v3936_v5 = vpop.f32.mrb[29].mxu1 }
 0x57b   : > { %v2362_v49 = vpop.f32.mrb[30].mxu1 }
 0x57c   : > { %2367 = vst.msk [vmem:[#allocation2 + $0x8] sm:$0xff] %vm2033_vm1, %v2366_v47  ;;  %v3937_v50 = vpop.f32.mrb[31].mxu1  ;;  %v2816_v47 = vlaneseq  ;;  %v2814_v49 = vld [vmem:[%s5160_s3] sm:$0x7] }
 0x57e   : > { %v2817_v5 = vshrl.u32 %v2816_v47, 7 }
 0x580   : > { %v2826_v40 = vsub.s32 2, %v2817_v5  ;;  %v2818_v50 = vsub.s32 0, %v2817_v5  ;;  %v2822_v51 = vsub.s32 1, %v2817_v5 }
 0x581   : > { %v2473_v53 = vpop.f32.mrb[32].mxu1 }
 0x582   : > { %v2480_v55 = vmul.f32 %v4522_v52, %v2473_v53  ;;  %v3948_v56 = vpop.f32.mrb[33].mxu1  ;;  %v2827_v52 = vrot.slane %v2814_v49, %v2826_v40  ;;  %v2819_v53 = vrot.slane %v2814_v49, %v2818_v50 }
 0x583   : > { %v2476_v57 = vpop.f32.mrb[34].mxu1 }
 0x584   : > { %v3949_v59 = vpop.f32.mrb[35].mxu1  ;;  %2482 = vrot.lane.b32.xlu0 %v2480_v55, %s4695_s24  ;;  %v2823_v55 = vrot.slane %v2814_v49, %v2822_v51 }
 0x589   : > { %v5084_v61 = vpop.f32.mrb[36].mxu1 }
 0x58a   : > { %v3960_v62 = vpop.f32.mrb[37].mxu1 }
 0x58b   : > { %v2588_v63 = vpop.f32.mrb[38].mxu1 }
 0x58c   : > { %v3961_v0 = vpop.f32.mrb[39].mxu1 }
 0x591   : > { %v2699_v2 = vpop.f32.mrb[40].mxu1 }
 0x592   : > { %v2706_v3 = vmul.f32 %v4524_v1, %v2699_v2  ;;  %v3972_v4 = vpop.f32.mrb[41].mxu1 }
 0x593   : > { %v2702_v6 = vpop.f32.mrb[42].mxu1 }
 0x594   : > { %2708 = vrot.lane.b32.xlu0 %v2706_v3, %s4695_s24  ;;  %v3973_v7 = vpop.f32.mrb[43].mxu1 }
 0x598   : > { %2542 = vadd.xlane.f32.xlu1 %v2541_v8 }
 0x5e6   : > { %v2256_v10 = vpop.permute.xlu1 %2255 }
 0x5e7   : > { %2259 = vst.msk [vmem:[#allocation2] sm:$0xff] %vm2258_vm4, %v2256_v10 }
 0x5ee   : > { %v2712_v12 = vld [vmem:[#allocation2] sm:$0xff] }
 0x5ef   : > { %v2715_v19 = vpack.c.bf16 %v2712_v12, %v2712_v12 }
 0x5f6   : > { %v2483_v11 = vpop.permute.xlu0 %2482 }
 0x5f7   : > { %2485 = vst.msk [vmem:[#allocation2 + $0x8] sm:$0xff] %vm2258_vm4, %v2483_v11 }
 0x5fe   : > { %v2713_v13 = vld [vmem:[#allocation2 + $0x8] sm:$0xff] }
 0x5ff   : > { %v2716_v15 = vpack.c.bf16 %v2713_v13, %v2713_v13 }
 0x601   : > { %3247 = vmatprep.mubr.bf16.mxu0 %v2716_v15  ;;  %3329 = vmatprep.mubr.bf16.mxu1 %v2716_v15 }
 0x602   : > { %3248 = vmatmul.mubr.bf16.vlgmr.msra.gmra.mrb[28].mxu0 %v2715_v19  ;;  %3330 = vmatmul.mubr.bf16.vlgmr.msra.gmra.mrb[44].mxu1 %v2715_v19 }
 0x603   : > { %3257 = vmatpush1.bf16.msra.mxu0 %v4471_v16  ;;  %3975 = vmatpush3.bf16.msra.mxu1 %v4474_v17 }
 0x604   : > { %3258 = vmatprep.subr.bf16.mxu0 %v4477_v20  ;;  %3976 = vmatprep.subr.bf16.mxu1 %v4693_v18 }
 0x605   : > { %3288 = vmatprep.mubr.bf16.mxu0 %v4692_v14  ;;  %3990 = vmatprep.mubr.msk.bf16.mxu1 %vm4694_vm0, %v4693_v18  ;;  %v4487_v14 = vld [vmem:[#allocation8 + $0x1e0] ss:$12 sps:$4 sm:$0xff]  }
 0x606   : > { %v2709_v39 = vpop.permute.xlu0 %2708 }
 0x607   : > { %3259 = vmatpush1.bf16.msra.mxu0 %v4475_v36  ;;  %3977 = vmatpush3.bf16.msra.mxu1 %v4478_v21 }
 0x608   : > { %3260 = vmatprep.subr.bf16.mxu0 %v4481_v22  ;;  %3978 = vmatprep.subr.bf16.mxu1 %v4693_v18 }
 0x60b   : > { %3261 = vmatpush1.bf16.msra.mxu0 %v4479_v23  ;;  %3979 = vmatpush3.bf16.msra.mxu1 %v4482_v58 }
 0x60c   : > { %3262 = vmatprep.subr.bf16.mxu0 %v4485_v54  ;;  %3980 = vmatprep.subr.bf16.mxu1 %v4693_v18 }
 0x60f   : > { %3263 = vmatpush1.bf16.msra.mxu0 %v4483_v24  ;;  %3981 = vmatpush3.bf16.msra.mxu1 %v4486_v9 }
 0x610   : > { %3264 = vmatprep.subr.bf16.mxu0 %v4489_v25  ;;  %3982 = vmatprep.subr.bf16.mxu1 %v4693_v18 }
 0x613   : > { %3265 = vmatpush1.bf16.msra.mxu0 %v4487_v14  ;;  %3983 = vmatpush3.bf16.msra.mxu1 %v4490_v26 }
 0x614   : > { %3266 = vmatprep.subr.bf16.mxu0 %v4493_v27  ;;  %3984 = vmatprep.subr.bf16.mxu1 %v4693_v18 }
 0x617   : > { %3267 = vmatpush1.bf16.msra.mxu0 %v4491_v48  ;;  %3985 = vmatpush3.bf16.msra.mxu1 %v4494_v28 }
 0x618   : > { %3268 = vmatprep.subr.bf16.mxu0 %v4497_v29  ;;  %3986 = vmatprep.subr.bf16.mxu1 %v4693_v18 }
 0x61b   : > { %3269 = vmatpush1.bf16.msra.mxu0 %v4495_v30  ;;  %3987 = vmatpush3.bf16.msra.mxu1 %v4498_v31 }
 0x61c   : > { %3270 = vmatprep.subr.bf16.mxu0 %v4501_v32  ;;  %3988 = vmatprep.subr.bf16.mxu1 %v4693_v18 }
 0x61f   : > { %3271 = vmatpush1.bf16.msra.mxu0 %v4499_v33  ;;  %3989 = vmatpush3.bf16.msra.mxu1 %v4502_v34 }
 0x625   : > { %v2543_v35 = vpop.xlane.xlu1 %2542 }
 0x626   : > { %4525 = vrcp.f32 %v2543_v35 }
 0x630   : > { %v4526_v37 = vpop.eup %4525 }
 0x631   : > { %v2592_v38 = vmul.f32 %v4526_v37, %v5084_v61 }
 0x633   : > { %2593 = vst.msk [vmem:[#allocation2 + $0x10] sm:$0xff] %vm2033_vm1, %v2592_v38 }
 0x634   : > { %2711 = vst.msk [vmem:[#allocation2 + $0x10] sm:$0xff] %vm2258_vm4, %v2709_v39 }
 0x63b   : > { %v2714_v41 = vld [vmem:[#allocation2 + $0x10] sm:$0xff] }
 0x63c   : > { %v2717_v42 = vpack.c.bf16 %v2714_v41, %v2714_v41 }
 0x63e   : > { %3289 = vmatmul.mubr.bf16.vlgmr.msra.gmra.mrb[28].mxu0 %v2717_v42  ;;  %3991 = vmatmul.mubr.bf16.vlgmr.msra.gmra.mrb[48].mxu1 %v2717_v42 }
 0x6d5   : > { %v3867_v43 = vpop.f32.mrb[44].mxu1 }
 0x6d6   : > { %v3868_v18 = vpop.f32.mrb[45].mxu1 }
 0x6d7   : > { %v3869_v44 = vadd.f32 %v3868_v18, %v3867_v43  ;;  %v3870_v45 = vpop.f32.mrb[46].mxu1 }
 0x6d8   : > { %v3871_v46 = vpop.f32.mrb[47].mxu1 }
 0x6d9   : > { %v3332_v56 = vadd.f32 %v3869_v44, %v2827_v52 }
 0x711   : > { %v3290_v57 = vpop.f32.mrb[28].mxu0  ;;  %v3371_v59 = vpop.f32.mrb[48].mxu1 }
 0x712   : > { %v3994_v60 = vadd.f32 %v3290_v57, %v2819_v53  ;;  %v3372_v61 = vadd.f32 %v3371_v59, %v3332_v56  ;;  %v3292_v62 = vpop.f32.mrb[29].mxu0  ;;  %v3992_v63 = vpop.f32.mrb[49].mxu1 }
 0x713   : > { %v3995_v0 = vadd.f32 %v3292_v62, %v2823_v55  ;;  %v3294_v1 = vpop.f32.mrb[30].mxu0  ;;  %v3374_v2 = vpop.f32.mrb[50].mxu1 }
 0x714   : > { %3377 = vst [vmem:[%s269_s6] sm:$0xff] %v3994_v60  ;;  %3379 = vst [vmem:[%s269_s6 + $0x10] sm:$0xff] %v3372_v61  ;;  %v3295_v3 = vpop.f32.mrb[31].mxu0  ;;  %v3993_v4 = vpop.f32.mrb[51].mxu1 }
 0x715   : > { %3378 = vst [vmem:[%s269_s6 + $0x8] sm:$0xff] %v3995_v0 }
 0x716   : > { %4626 = shalt.err (!%p4623_p2)
}
 0x717   : > { %s4627_s14 = scalar_lea.hbm %s5113_s10, 384  ;;  %s4631_s8 = scalar_lea.hbm %s5162_s5, 768 }
 0x718   : > { %p4628_p13 = scmp.ne.s32.totalorder %s5113_s10, %s4627_s14  ;;  %p4632_p4 = scmp.lt.u32.totalorder %s5113_s10, %s5162_s5 }
 0x719   : > { %p4633_p7 = scmp.lt.u32.totalorder %s4631_s8, %s4627_s14  ;;  %p4635_p11 = scmp.lt.u32.totalorder %s4627_s14, %s5113_s10 }
 0x71a   : > { %p4629_p6 = pnand %p4628_p13, %p5176_p0 }
 0x71b   : > { %p4634_p8 = por %p4633_p7, %p4632_p4 }
 0x71c   : > { %p4630_p10 = pneg %p4629_p6 }
 0x71d   : > { %p4636_p1 = por %p4635_p11, %p4634_p8 }
 0x71f   : > { %p4637_p3 = pnand %p4636_p1, %p4630_p10 }
 0x721   : > { %4640 = shalt.err (!%p4637_p3)
}
 0x722   : > { %4030 = dma.vmem_to_hbm [thread:$0]  (%p5176_p0), %s5115_s9, 384, %s5113_s10, %s3381_s22  }
 0x723 PF: > { %s3407_s13 = sand.u32 1, %s4671_s18   ;;  %p5177_p5 = scmp.ne.s32.totalorder %s5167_s25, 0 }
 0x724   : > { %p5178_p9 = scmp.ge.s32.totalorder %s4683_s21, 2  ;;  %s3408_s6 = scalar_lea.sflag [#allocation5], %s3407_s13 }
 0x726   : > { %p4044_p12 = pnand %p5178_p9, %p5177_p5 }
 0x728   : > { %4666 = dma.done.wait (!%p4044_p12), %s3408_s6, 384  }
 0x729   : > { %4668 = vsyncadd (!%p4044_p12), %s3408_s6, 4294966912  ;;  %p19_p2 = scmp.ge.s32.totalorder %s4837_s16, 4   ;;  %s5179_s18 = smov %s4675_s19 }
 0x72a   : > { %s5180_s19 = smov %s4679_s20  ;;  %s5181_s20 = smov %s4846_s27 }
 0x72b   : > { %s5182_s21 = smov %s4837_s16  ;;  %21 = sbr.rel (!%p19_p2) target bundleno = 6 (0x6), region = 93 }
 0x732   :  { %3413 = vsyncpa [#allocation4], 1 }
 0x733   :  { %3415 = vsyncpa [#allocation4 + $0x1], 1 }
 0x734   :  { %3416 = vsyncpa [#allocation7], 1 }
 0x735   :  { %3417 = vsyncpa [#allocation5], 1 }
 0x736   :  { %3419 = vsyncpa [#allocation5 + $0x1], 1 }

</bundles_post_ra>
